<compile_context>
chip_gen: v6e
topology: v6e:2x2x1
jax: 0.10.0
libtpu: 0.0.40
codegen_flags: <defaults>
</compile_context>

<pallas_src>
import functools

import jax
import jax.numpy as jnp
from jax.experimental import pallas as pl
from jax.experimental.pallas import tpu as pltpu


# ----------------------------- helpers -------------------------------------


def _hswish(x):
    # x * relu6(x + 3) / 6
    return x * jnp.clip(x + 3.0, 0.0, 6.0) * (1.0 / 6.0)


def _nl(x, kind):
    if kind == "RE":
        return jnp.maximum(x, 0.0)
    return _hswish(x)


def _fold_bn(gamma, beta, mean, var, eps=1e-5):
    scale = gamma / jnp.sqrt(var + eps)
    bias = beta - mean * scale
    return scale, bias


# ----------------------------- the kernel -----------------------------------


def _basic_block_kernel(
    x_ref,                 # (1, Cin, HW) bf16   input image (NCHW, HW flattened)
    w1t_ref, b1_ref,       # (E, Cin) bf16, (E, 1) f32    expand 1x1 (BN folded)
    wdw_ref, dwmask_ref,   # (K*K, E, 1) f32, (K*K, 1, HW) f32  depthwise taps
    b2_ref,                # (E, 1) f32
    w3t_ref, b3_ref,       # (P, E) bf16, (P, 1) f32      project 1x1 (BN folded)
    fc1w_ref, fc1b_ref,    # (R, P) f32, (R, 1) f32       SE fc1
    fc2w_ref, fc2b_ref,    # (P, R) f32, (P, 1) f32       SE fc2
    wskt_ref, bsk_ref,     # (P, Cin) bf16, (P, 1) f32    skip 1x1 conv (BN folded)
    out_ref,               # (1, P, HW) f32
    *,
    H, W, K, NL, use_se, use_skip,
):
    HW = H * W
    p = K // 2

    x = x_ref[0]                                         # (Cin, HW) bf16

    # --- 1x1 expand conv (BN scale folded into weights) + bias + NL --------
    t1 = jnp.dot(w1t_ref[...], x, preferred_element_type=jnp.float32)
    t1 = _nl(t1 + b1_ref[...], NL)                       # (E, HW) f32

    # --- KxK depthwise conv via lane rolls + precomputed border masks ------
    # A tap offset (rh, rw) is a shift of delta = rh*W + rw along the flat
    # H*W lane axis; positions whose (h+rh, w+rw) falls outside the image
    # (including circular wrap-around) are zeroed by the 0/1 masks computed
    # in the wrapper.  pltpu.roll uses the XLU slot, so it does not compete
    # with the VPU / MXU work.
    probe = jax.lax.broadcasted_iota(jnp.int32, (1, HW), 1)
    # Rotate-direction probe (makes the shift robust to either rotate
    # convention of the hardware rotate op).
    fwd = (pltpu.roll(probe, 1, axis=1)[:, 0:1] == (HW - 1)).astype(jnp.float32)
    bwd = 1.0 - fwd

    def shift_flat(v, delta):
        # y[:, i] = v[:, i + delta]  (circular; invalid taps masked by caller)
        if delta == 0:
            return v
        s = (-delta) % HW
        return (pltpu.roll(v, s, axis=1) * fwd
                + pltpu.roll(v, HW - s, axis=1) * bwd)

    acc = jnp.zeros_like(t1)
    for dh in range(K):
        for dw in range(K):
            k = dh * K + dw
            delta = (dh - p) * W + (dw - p)
            tap = shift_flat(t1, delta) * dwmask_ref[k]   # (E,HW) * (1,HW)
            acc = acc + tap * wdw_ref[k]                  # * (E,1) per-channel
    t2 = _nl(acc + b2_ref[...], NL)                       # (E, HW) f32

    # --- 1x1 project conv (BN scale folded) + bias --------------------------
    out = jnp.dot(w3t_ref[...], t2.astype(jnp.bfloat16),
                  preferred_element_type=jnp.float32) + b3_ref[...]   # (P, HW)

    # --- SE block ------------------------------------------------------------
    if use_se:
        s = jnp.mean(out, axis=1, keepdims=True)          # (P, 1) global avg pool
        h1 = jnp.maximum(
            jnp.dot(fc1w_ref[...], s, preferred_element_type=jnp.float32)
            + fc1b_ref[...], 0.0)                         # (R, 1)
        gate = jax.nn.sigmoid(
            jnp.dot(fc2w_ref[...], h1, preferred_element_type=jnp.float32)
            + fc2b_ref[...])                              # (P, 1)
        out = out * gate

    # --- skip connection: 1x1 conv + folded BN on the block input -----------
    if use_skip:
        sk = jnp.dot(wskt_ref[...], x, preferred_element_type=jnp.float32)
        out = out + sk + bsk_ref[...]

    out_ref[0] = out.astype(out_ref.dtype)


# ----------------------------- module wrapper --------------------------------


class BasicBlockPallas:
    """Deterministically-initialized Pallas version of BasicBlock (inference BN)."""

    def __init__(self, inplanes, planes, kernel_size, exp_size, stride,
                 NL="HS", SE=False, seed=0):
        assert stride == 1, "this Pallas kernel implements the stride==1 path"
        self.inplanes, self.planes = inplanes, planes
        self.kernel_size, self.exp_size = kernel_size, exp_size
        self.NL = NL
        self.use_se = bool(SE)
        self.use_skip = (stride == 1 and inplanes == planes)

        key = jax.random.PRNGKey(seed)
        ks = jax.random.split(key, 12)

        def rnd(k, shape, scale=0.2):
            return jax.random.normal(k, shape, jnp.float32) * scale

        def bn(k, c):
            k1, k2, k3, k4 = jax.random.split(k, 4)
            gamma = 1.0 + 0.1 * jax.random.normal(k1, (c,), jnp.float32)
            beta = 0.1 * jax.random.normal(k2, (c,), jnp.float32)
            mean = 0.1 * jax.random.normal(k3, (c,), jnp.float32)
            var = 0.5 + 0.1 * jnp.abs(jax.random.normal(k4, (c,), jnp.float32))
            return _fold_bn(gamma, beta, mean, var)

        K = kernel_size
        red = max(planes // 4, 1)

        w1 = rnd(ks[0], (inplanes, exp_size))          # conv1 (1x1 expand)
        s1, b1 = bn(ks[1], exp_size)
        wdw = rnd(ks[2], (K * K, exp_size))            # depthwise conv2
        s2, b2 = bn(ks[3], exp_size)
        w3 = rnd(ks[4], (exp_size, planes))            # conv3 (1x1 project)
        s3, b3 = bn(ks[5], planes)
        fc1w = rnd(ks[6], (red, planes))               # SE fc1 (P -> red)
        fc1b = rnd(ks[7], (red,), 0.05)
        fc2w = rnd(ks[8], (planes, red))               # SE fc2 (red -> P)
        fc2b = rnd(ks[9], (planes,), 0.05)
        wsk = rnd(ks[10], (inplanes, planes))          # skip 1x1 conv
        ssk, bsk = bn(ks[11], planes)

        # Fold BN scales into the conv weights (review: removes one full VPU
        # multiply pass per stage), transpose for the (C, H*W) layout, and
        # keep the MXU operands in bf16.
        self.w1t = (w1 * s1[None, :]).T.astype(jnp.bfloat16)      # (E, Cin)
        self.b1 = b1[:, None]                                     # (E, 1)
        self.wdw = (wdw * s2[None, :])[:, :, None]                # (K*K, E, 1)
        self.b2 = b2[:, None]                                     # (E, 1)
        self.w3t = (w3 * s3[None, :]).T.astype(jnp.bfloat16)      # (P, E)
        self.b3 = b3[:, None]                                     # (P, 1)
        self.fc1w, self.fc1b = fc1w, fc1b[:, None]                # (R,P), (R,1)
        self.fc2w, self.fc2b = fc2w, fc2b[:, None]                # (P,R), (P,1)
        self.wskt = (wsk * ssk[None, :]).T.astype(jnp.bfloat16)   # (P, Cin)
        self.bsk = bsk[:, None]                                   # (P, 1)

    # ------------------------------------------------------------- dw masks

    def _dw_masks(self, H, W):
        """0/1 validity mask per depthwise tap, flattened to (K*K, 1, H*W)."""
        K = self.kernel_size
        p = K // 2
        hh = jnp.arange(H)
        ww = jnp.arange(W)
        masks = []
        for dh in range(K):
            rh = dh - p
            for dw in range(K):
                rw = dw - p
                mh = ((hh + rh) >= 0) & ((hh + rh) < H)          # (H,)
                mw = ((ww + rw) >= 0) & ((ww + rw) < W)          # (W,)
                m = (mh[:, None] & mw[None, :]).reshape(1, H * W)
                masks.append(m.astype(jnp.float32))
        return jnp.stack(masks, axis=0)                          # (K*K, 1, HW)

    # ------------------------------------------------------------------ call

    def __call__(self, x_nchw):
        N, Cin, H, W = x_nchw.shape
        assert Cin == self.inplanes
        HW = H * W
        E, P, K = self.exp_size, self.planes, self.kernel_size

        # NCHW-native: only a free reshape + bf16 cast at the boundary
        # (bf16 input halves HBM traffic; matters most on v5e).
        x = x_nchw.reshape(N, Cin, HW).astype(jnp.bfloat16)
        dwmask = self._dw_masks(H, W)

        args = (
            x,
            self.w1t, self.b1,
            self.wdw, dwmask, self.b2,
            self.w3t, self.b3,
            self.fc1w, self.fc1b, self.fc2w, self.fc2b,
            self.wskt, self.bsk,
        )

        # Constant-index (weight) blocks: full arrays, fetched once.
        # TODO(synk): single-buffer these (pl.Buffered(1)) to reclaim VMEM on v7x.
        def full_spec(a):
            nd = a.ndim

            def imap(n):
                return (0,) * nd

            return pl.BlockSpec(a.shape, imap)

        in_specs = [pl.BlockSpec((1, Cin, HW), lambda n: (n, 0, 0))]
        in_specs += [full_spec(a) for a in args[1:]]

        kernel = functools.partial(
            _basic_block_kernel,
            H=H, W=W, K=K, NL=self.NL,
            use_se=self.use_se, use_skip=self.use_skip)

        out = pl.pallas_call(
            kernel,
            out_shape=jax.ShapeDtypeStruct((N, P, HW), jnp.float32),
            grid_spec=pltpu.PrefetchScalarGridSpec(
                num_scalar_prefetch=0,
                grid=(N,),
                in_specs=in_specs,
                out_specs=pl.BlockSpec((1, P, HW), lambda n: (n, 0, 0)),
            ),
            compiler_params=pltpu.CompilerParams(
                dimension_semantics=("parallel",),
                vmem_limit_bytes=32 * 1024 * 1024),
        )(*args)

        return out.reshape(N, P, H, W)                 # NCHW, free reshape

    # ---------------------------------------------------------- pure-JAX ref

    def reference(self, x_nchw):
        N, Cin, H, W = x_nchw.shape
        HW = H * W
        K, E, P = self.kernel_size, self.exp_size, self.planes
        p = K // 2

        xb = x_nchw.reshape(N, Cin, HW).astype(jnp.bfloat16)

        t1 = jnp.einsum("ec,nch->neh", self.w1t, xb,
                        preferred_element_type=jnp.float32)
        t1 = _nl(t1 + self.b1[None], self.NL)                      # (N, E, HW)

        tp = jnp.pad(t1.reshape(N, E, H, W), ((0, 0), (0, 0), (p, p), (p, p)))
        wdw_k = self.wdw[:, :, 0]                                  # (K*K, E)
        acc = jnp.zeros((N, E, H, W), jnp.float32)
        for dh in range(K):
            for dw in range(K):
                k = dh * K + dw
                acc = acc + (tp[:, :, dh:dh + H, dw:dw + W]
                             * wdw_k[k][None, :, None, None])
        t2 = _nl(acc.reshape(N, E, HW) + self.b2[None], self.NL)   # (N, E, HW)

        out = jnp.einsum("pe,neh->nph", self.w3t, t2.astype(jnp.bfloat16),
                         preferred_element_type=jnp.float32) + self.b3[None]

        if self.use_se:
            s = out.mean(axis=2, keepdims=True)                    # (N, P, 1)
            h1 = jnp.maximum(
                jnp.einsum("rp,nps->nrs", self.fc1w, s) + self.fc1b[None], 0.0)
            gate = jax.nn.sigmoid(
                jnp.einsum("pr,nrs->nps", self.fc2w, h1) + self.fc2b[None])
            out = out * gate

        if self.use_skip:
            sk = jnp.einsum("pc,nch->nph", self.wskt, xb,
                            preferred_element_type=jnp.float32)
            out = out + sk + self.bsk[None]

        return out.reshape(N, P, H, W)


# --------------------------------- main --------------------------------------

if __name__ == "__main__":
    # BasicBlock(inplanes=8, planes=8, kernel_size=3, exp_size=16,
    #            stride=1, NL='HS', SE=True)  -> skip-connect branch active.
    block = BasicBlockPallas(inplanes=8, planes=8, kernel_size=3,
                             exp_size=16, stride=1, NL="HS", SE=True, seed=0)

    x = jax.random.normal(jax.random.PRNGKey(0), (2, 8, 16, 16), jnp.float32)

    out = jax.block_until_ready(block(x))
    ref = jax.block_until_ready(block.reference(x))

    assert out.shape == (2, 8, 16, 16), out.shape
    max_err = float(jnp.max(jnp.abs(out - ref)))
    assert jnp.allclose(out, ref, atol=1e-2, rtol=1e-2), max_err

    print("KERNEL_OK")
</pallas_src>

<mosaic_0001>
module attributes {stable_mosaic.version = 11 : i64} {
  func.func @_basic_block_kernel(%arg0: i32, %arg1: memref<1x8x256xbf16, #tpu.memory_space<vmem>>, %arg2: memref<16x8xbf16, #tpu.memory_space<vmem>>, %arg3: memref<16x1xf32, #tpu.memory_space<vmem>>, %arg4: memref<9x16x1xf32, #tpu.memory_space<vmem>>, %arg5: memref<9x1x256xf32, #tpu.memory_space<vmem>>, %arg6: memref<16x1xf32, #tpu.memory_space<vmem>>, %arg7: memref<8x16xbf16, #tpu.memory_space<vmem>>, %arg8: memref<8x1xf32, #tpu.memory_space<vmem>>, %arg9: memref<2x8xf32, #tpu.memory_space<vmem>>, %arg10: memref<2x1xf32, #tpu.memory_space<vmem>>, %arg11: memref<8x2xf32, #tpu.memory_space<vmem>>, %arg12: memref<8x1xf32, #tpu.memory_space<vmem>>, %arg13: memref<8x8xbf16, #tpu.memory_space<vmem>>, %arg14: memref<8x1xf32, #tpu.memory_space<vmem>>, %arg15: memref<1x8x256xf32, #tpu.memory_space<vmem>>) attributes {dimension_semantics = [#tpu.dimension_semantics<parallel>], iteration_bounds = array<i64: 2>, scalar_prefetch = 0 : i64, scratch_operands = 0 : i64, tpu.core_type = #tpu.core_type<tc>, window_params = [{transform_indices = @transform_0, window_bounds = array<i64: 1, 8, 256>}, {pipeline_mode = #tpu.pipeline_mode<synchronous>, transform_indices = @transform_1, window_bounds = array<i64: 16, 8>}, {pipeline_mode = #tpu.pipeline_mode<synchronous>, transform_indices = @transform_2, window_bounds = array<i64: 16, 1>}, {pipeline_mode = #tpu.pipeline_mode<synchronous>, transform_indices = @transform_3, window_bounds = array<i64: 9, 16, 1>}, {pipeline_mode = #tpu.pipeline_mode<synchronous>, transform_indices = @transform_4, window_bounds = array<i64: 9, 1, 256>}, {pipeline_mode = #tpu.pipeline_mode<synchronous>, transform_indices = @transform_5, window_bounds = array<i64: 16, 1>}, {pipeline_mode = #tpu.pipeline_mode<synchronous>, transform_indices = @transform_6, window_bounds = array<i64: 8, 16>}, {pipeline_mode = #tpu.pipeline_mode<synchronous>, transform_indices = @transform_7, window_bounds = array<i64: 8, 1>}, {pipeline_mode = #tpu.pipeline_mode<synchronous>, transform_indices = @transform_8, window_bounds = array<i64: 2, 8>}, {pipeline_mode = #tpu.pipeline_mode<synchronous>, transform_indices = @transform_9, window_bounds = array<i64: 2, 1>}, {pipeline_mode = #tpu.pipeline_mode<synchronous>, transform_indices = @transform_10, window_bounds = array<i64: 8, 2>}, {pipeline_mode = #tpu.pipeline_mode<synchronous>, transform_indices = @transform_11, window_bounds = array<i64: 8, 1>}, {pipeline_mode = #tpu.pipeline_mode<synchronous>, transform_indices = @transform_12, window_bounds = array<i64: 8, 8>}, {pipeline_mode = #tpu.pipeline_mode<synchronous>, transform_indices = @transform_13, window_bounds = array<i64: 8, 1>}, {transform_indices = @transform_14, window_bounds = array<i64: 1, 8, 256>}]} {
    %c0 = arith.constant 0 : index
    %c0_0 = arith.constant 0 : index
    %c0_1 = arith.constant 0 : index
    %0 = vector.load %arg1[%c0, %c0_0, %c0_1] : memref<1x8x256xbf16, #tpu.memory_space<vmem>>, vector<1x8x256xbf16>
    %1 = vector.shape_cast %0 : vector<1x8x256xbf16> to vector<8x256xbf16>
    %c0_2 = arith.constant 0 : index
    %c0_3 = arith.constant 0 : index
    %2 = vector.load %arg2[%c0_2, %c0_3] : memref<16x8xbf16, #tpu.memory_space<vmem>>, vector<16x8xbf16>
    %cst = arith.constant dense<0.000000e+00> : vector<16x256xf32>
    %3 = tpu.matmul %2, %1, %cst {dimension_numbers = #tpu.dot_dimension_numbers<[1], [0], [0], [1], [0, 0, 1, 1], [], []>} : vector<16x8xbf16>, vector<8x256xbf16>, vector<16x256xf32> -> vector<16x256xf32>
    %c0_4 = arith.constant 0 : index
    %c0_5 = arith.constant 0 : index
    %4 = vector.load %arg3[%c0_4, %c0_5] : memref<16x1xf32, #tpu.memory_space<vmem>>, vector<16x1xf32>
    %5 = vector.broadcast %4 : vector<16x1xf32> to vector<16x256xf32>
    %6 = arith.addf %3, %5 : vector<16x256xf32>
    %cst_6 = arith.constant 3.000000e+00 : f32
    %7 = vector.broadcast %cst_6 : f32 to vector<16x256xf32>
    %8 = arith.addf %6, %7 : vector<16x256xf32>
    %cst_7 = arith.constant 0.000000e+00 : f32
    %cst_8 = arith.constant 6.000000e+00 : f32
    %9 = vector.broadcast %cst_7 : f32 to vector<16x256xf32>
    %10 = arith.maximumf %9, %8 : vector<16x256xf32>
    %11 = vector.broadcast %cst_8 : f32 to vector<16x256xf32>
    %12 = arith.minimumf %11, %10 : vector<16x256xf32>
    %13 = arith.mulf %6, %12 : vector<16x256xf32>
    %cst_9 = arith.constant 0.166666672 : f32
    %14 = vector.broadcast %cst_9 : f32 to vector<16x256xf32>
    %15 = arith.mulf %13, %14 : vector<16x256xf32>
    %16 = tpu.iota {dimensions = array<i32: 1>} : vector<1x256xi32>
    %c1_i32 = arith.constant 1 : i32
    %17 = tpu.dynamic_rotate %16 by %c1_i32 dim 1 : vector<1x256xi32>, i32 -> vector<1x256xi32>
    %18 = vector.extract_strided_slice %17 {offsets = [0, 0], sizes = [1, 1], strides = [1, 1]} : vector<1x256xi32> to vector<1x1xi32>
    %c255_i32 = arith.constant 255 : i32
    %19 = vector.broadcast %c255_i32 : i32 to vector<1x1xi32>
    %20 = arith.cmpi eq, %18, %19 : vector<1x1xi32>
    %21 = arith.extui %20 : vector<1x1xi1> to vector<1x1xi32>
    %22 = arith.sitofp %21 : vector<1x1xi32> to vector<1x1xf32>
    %cst_10 = arith.constant 1.000000e+00 : f32
    %23 = vector.broadcast %cst_10 : f32 to vector<1x1xf32>
    %24 = arith.subf %23, %22 : vector<1x1xf32>
    %cst_11 = arith.constant 0.000000e+00 : f32
    %25 = vector.broadcast %cst_11 : f32 to vector<16x256xf32>
    %c17_i32 = arith.constant 17 : i32
    %26 = tpu.dynamic_rotate %15 by %c17_i32 dim 1 : vector<16x256xf32>, i32 -> vector<16x256xf32>
    %27 = vector.broadcast %22 : vector<1x1xf32> to vector<16x256xf32>
    %28 = arith.mulf %26, %27 : vector<16x256xf32>
    %c239_i32 = arith.constant 239 : i32
    %29 = tpu.dynamic_rotate %15 by %c239_i32 dim 1 : vector<16x256xf32>, i32 -> vector<16x256xf32>
    %30 = vector.broadcast %24 : vector<1x1xf32> to vector<16x256xf32>
    %31 = arith.mulf %29, %30 : vector<16x256xf32>
    %32 = arith.addf %28, %31 : vector<16x256xf32>
    %c0_12 = arith.constant 0 : index
    %c0_13 = arith.constant 0 : index
    %c0_14 = arith.constant 0 : index
    %33 = vector.load %arg5[%c0_12, %c0_13, %c0_14] : memref<9x1x256xf32, #tpu.memory_space<vmem>>, vector<1x1x256xf32>
    %34 = vector.shape_cast %33 : vector<1x1x256xf32> to vector<1x256xf32>
    %35 = vector.broadcast %34 : vector<1x256xf32> to vector<16x256xf32>
    %36 = arith.mulf %32, %35 : vector<16x256xf32>
    %c0_15 = arith.constant 0 : index
    %c0_16 = arith.constant 0 : index
    %c0_17 = arith.constant 0 : index
    %37 = vector.load %arg4[%c0_15, %c0_16, %c0_17] : memref<9x16x1xf32, #tpu.memory_space<vmem>>, vector<1x16x1xf32>
    %38 = vector.shape_cast %37 : vector<1x16x1xf32> to vector<16x1xf32>
    %39 = vector.broadcast %38 : vector<16x1xf32> to vector<16x256xf32>
    %40 = arith.mulf %36, %39 : vector<16x256xf32>
    %41 = arith.addf %25, %40 : vector<16x256xf32>
    %c16_i32 = arith.constant 16 : i32
    %42 = tpu.dynamic_rotate %15 by %c16_i32 dim 1 : vector<16x256xf32>, i32 -> vector<16x256xf32>
    %43 = vector.broadcast %22 : vector<1x1xf32> to vector<16x256xf32>
    %44 = arith.mulf %42, %43 : vector<16x256xf32>
    %c240_i32 = arith.constant 240 : i32
    %45 = tpu.dynamic_rotate %15 by %c240_i32 dim 1 : vector<16x256xf32>, i32 -> vector<16x256xf32>
    %46 = vector.broadcast %24 : vector<1x1xf32> to vector<16x256xf32>
    %47 = arith.mulf %45, %46 : vector<16x256xf32>
    %48 = arith.addf %44, %47 : vector<16x256xf32>
    %c1 = arith.constant 1 : index
    %c0_18 = arith.constant 0 : index
    %c0_19 = arith.constant 0 : index
    %49 = vector.load %arg5[%c1, %c0_18, %c0_19] : memref<9x1x256xf32, #tpu.memory_space<vmem>>, vector<1x1x256xf32>
    %50 = vector.shape_cast %49 : vector<1x1x256xf32> to vector<1x256xf32>
    %51 = vector.broadcast %50 : vector<1x256xf32> to vector<16x256xf32>
    %52 = arith.mulf %48, %51 : vector<16x256xf32>
    %c1_20 = arith.constant 1 : index
    %c0_21 = arith.constant 0 : index
    %c0_22 = arith.constant 0 : index
    %53 = vector.load %arg4[%c1_20, %c0_21, %c0_22] : memref<9x16x1xf32, #tpu.memory_space<vmem>>, vector<1x16x1xf32>
    %54 = vector.shape_cast %53 : vector<1x16x1xf32> to vector<16x1xf32>
    %55 = vector.broadcast %54 : vector<16x1xf32> to vector<16x256xf32>
    %56 = arith.mulf %52, %55 : vector<16x256xf32>
    %57 = arith.addf %41, %56 : vector<16x256xf32>
    %c15_i32 = arith.constant 15 : i32
    %58 = tpu.dynamic_rotate %15 by %c15_i32 dim 1 : vector<16x256xf32>, i32 -> vector<16x256xf32>
    %59 = vector.broadcast %22 : vector<1x1xf32> to vector<16x256xf32>
    %60 = arith.mulf %58, %59 : vector<16x256xf32>
    %c241_i32 = arith.constant 241 : i32
    %61 = tpu.dynamic_rotate %15 by %c241_i32 dim 1 : vector<16x256xf32>, i32 -> vector<16x256xf32>
    %62 = vector.broadcast %24 : vector<1x1xf32> to vector<16x256xf32>
    %63 = arith.mulf %61, %62 : vector<16x256xf32>
    %64 = arith.addf %60, %63 : vector<16x256xf32>
    %c2 = arith.constant 2 : index
    %c0_23 = arith.constant 0 : index
    %c0_24 = arith.constant 0 : index
    %65 = vector.load %arg5[%c2, %c0_23, %c0_24] : memref<9x1x256xf32, #tpu.memory_space<vmem>>, vector<1x1x256xf32>
    %66 = vector.shape_cast %65 : vector<1x1x256xf32> to vector<1x256xf32>
    %67 = vector.broadcast %66 : vector<1x256xf32> to vector<16x256xf32>
    %68 = arith.mulf %64, %67 : vector<16x256xf32>
    %c2_25 = arith.constant 2 : index
    %c0_26 = arith.constant 0 : index
    %c0_27 = arith.constant 0 : index
    %69 = vector.load %arg4[%c2_25, %c0_26, %c0_27] : memref<9x16x1xf32, #tpu.memory_space<vmem>>, vector<1x16x1xf32>
    %70 = vector.shape_cast %69 : vector<1x16x1xf32> to vector<16x1xf32>
    %71 = vector.broadcast %70 : vector<16x1xf32> to vector<16x256xf32>
    %72 = arith.mulf %68, %71 : vector<16x256xf32>
    %73 = arith.addf %57, %72 : vector<16x256xf32>
    %c1_i32_28 = arith.constant 1 : i32
    %74 = tpu.dynamic_rotate %15 by %c1_i32_28 dim 1 : vector<16x256xf32>, i32 -> vector<16x256xf32>
    %75 = vector.broadcast %22 : vector<1x1xf32> to vector<16x256xf32>
    %76 = arith.mulf %74, %75 : vector<16x256xf32>
    %c255_i32_29 = arith.constant 255 : i32
    %77 = tpu.dynamic_rotate %15 by %c255_i32_29 dim 1 : vector<16x256xf32>, i32 -> vector<16x256xf32>
    %78 = vector.broadcast %24 : vector<1x1xf32> to vector<16x256xf32>
    %79 = arith.mulf %77, %78 : vector<16x256xf32>
    %80 = arith.addf %76, %79 : vector<16x256xf32>
    %c3 = arith.constant 3 : index
    %c0_30 = arith.constant 0 : index
    %c0_31 = arith.constant 0 : index
    %81 = vector.load %arg5[%c3, %c0_30, %c0_31] : memref<9x1x256xf32, #tpu.memory_space<vmem>>, vector<1x1x256xf32>
    %82 = vector.shape_cast %81 : vector<1x1x256xf32> to vector<1x256xf32>
    %83 = vector.broadcast %82 : vector<1x256xf32> to vector<16x256xf32>
    %84 = arith.mulf %80, %83 : vector<16x256xf32>
    %c3_32 = arith.constant 3 : index
    %c0_33 = arith.constant 0 : index
    %c0_34 = arith.constant 0 : index
    %85 = vector.load %arg4[%c3_32, %c0_33, %c0_34] : memref<9x16x1xf32, #tpu.memory_space<vmem>>, vector<1x16x1xf32>
    %86 = vector.shape_cast %85 : vector<1x16x1xf32> to vector<16x1xf32>
    %87 = vector.broadcast %86 : vector<16x1xf32> to vector<16x256xf32>
    %88 = arith.mulf %84, %87 : vector<16x256xf32>
    %89 = arith.addf %73, %88 : vector<16x256xf32>
    %c4 = arith.constant 4 : index
    %c0_35 = arith.constant 0 : index
    %c0_36 = arith.constant 0 : index
    %90 = vector.load %arg5[%c4, %c0_35, %c0_36] : memref<9x1x256xf32, #tpu.memory_space<vmem>>, vector<1x1x256xf32>
    %91 = vector.shape_cast %90 : vector<1x1x256xf32> to vector<1x256xf32>
    %92 = vector.broadcast %91 : vector<1x256xf32> to vector<16x256xf32>
    %93 = arith.mulf %15, %92 : vector<16x256xf32>
    %c4_37 = arith.constant 4 : index
    %c0_38 = arith.constant 0 : index
    %c0_39 = arith.constant 0 : index
    %94 = vector.load %arg4[%c4_37, %c0_38, %c0_39] : memref<9x16x1xf32, #tpu.memory_space<vmem>>, vector<1x16x1xf32>
    %95 = vector.shape_cast %94 : vector<1x16x1xf32> to vector<16x1xf32>
    %96 = vector.broadcast %95 : vector<16x1xf32> to vector<16x256xf32>
    %97 = arith.mulf %93, %96 : vector<16x256xf32>
    %98 = arith.addf %89, %97 : vector<16x256xf32>
    %c255_i32_40 = arith.constant 255 : i32
    %99 = tpu.dynamic_rotate %15 by %c255_i32_40 dim 1 : vector<16x256xf32>, i32 -> vector<16x256xf32>
    %100 = vector.broadcast %22 : vector<1x1xf32> to vector<16x256xf32>
    %101 = arith.mulf %99, %100 : vector<16x256xf32>
    %c1_i32_41 = arith.constant 1 : i32
    %102 = tpu.dynamic_rotate %15 by %c1_i32_41 dim 1 : vector<16x256xf32>, i32 -> vector<16x256xf32>
    %103 = vector.broadcast %24 : vector<1x1xf32> to vector<16x256xf32>
    %104 = arith.mulf %102, %103 : vector<16x256xf32>
    %105 = arith.addf %101, %104 : vector<16x256xf32>
    %c5 = arith.constant 5 : index
    %c0_42 = arith.constant 0 : index
    %c0_43 = arith.constant 0 : index
    %106 = vector.load %arg5[%c5, %c0_42, %c0_43] : memref<9x1x256xf32, #tpu.memory_space<vmem>>, vector<1x1x256xf32>
    %107 = vector.shape_cast %106 : vector<1x1x256xf32> to vector<1x256xf32>
    %108 = vector.broadcast %107 : vector<1x256xf32> to vector<16x256xf32>
    %109 = arith.mulf %105, %108 : vector<16x256xf32>
    %c5_44 = arith.constant 5 : index
    %c0_45 = arith.constant 0 : index
    %c0_46 = arith.constant 0 : index
    %110 = vector.load %arg4[%c5_44, %c0_45, %c0_46] : memref<9x16x1xf32, #tpu.memory_space<vmem>>, vector<1x16x1xf32>
    %111 = vector.shape_cast %110 : vector<1x16x1xf32> to vector<16x1xf32>
    %112 = vector.broadcast %111 : vector<16x1xf32> to vector<16x256xf32>
    %113 = arith.mulf %109, %112 : vector<16x256xf32>
    %114 = arith.addf %98, %113 : vector<16x256xf32>
    %c241_i32_47 = arith.constant 241 : i32
    %115 = tpu.dynamic_rotate %15 by %c241_i32_47 dim 1 : vector<16x256xf32>, i32 -> vector<16x256xf32>
    %116 = vector.broadcast %22 : vector<1x1xf32> to vector<16x256xf32>
    %117 = arith.mulf %115, %116 : vector<16x256xf32>
    %c15_i32_48 = arith.constant 15 : i32
    %118 = tpu.dynamic_rotate %15 by %c15_i32_48 dim 1 : vector<16x256xf32>, i32 -> vector<16x256xf32>
    %119 = vector.broadcast %24 : vector<1x1xf32> to vector<16x256xf32>
    %120 = arith.mulf %118, %119 : vector<16x256xf32>
    %121 = arith.addf %117, %120 : vector<16x256xf32>
    %c6 = arith.constant 6 : index
    %c0_49 = arith.constant 0 : index
    %c0_50 = arith.constant 0 : index
    %122 = vector.load %arg5[%c6, %c0_49, %c0_50] : memref<9x1x256xf32, #tpu.memory_space<vmem>>, vector<1x1x256xf32>
    %123 = vector.shape_cast %122 : vector<1x1x256xf32> to vector<1x256xf32>
    %124 = vector.broadcast %123 : vector<1x256xf32> to vector<16x256xf32>
    %125 = arith.mulf %121, %124 : vector<16x256xf32>
    %c6_51 = arith.constant 6 : index
    %c0_52 = arith.constant 0 : index
    %c0_53 = arith.constant 0 : index
    %126 = vector.load %arg4[%c6_51, %c0_52, %c0_53] : memref<9x16x1xf32, #tpu.memory_space<vmem>>, vector<1x16x1xf32>
    %127 = vector.shape_cast %126 : vector<1x16x1xf32> to vector<16x1xf32>
    %128 = vector.broadcast %127 : vector<16x1xf32> to vector<16x256xf32>
    %129 = arith.mulf %125, %128 : vector<16x256xf32>
    %130 = arith.addf %114, %129 : vector<16x256xf32>
    %c240_i32_54 = arith.constant 240 : i32
    %131 = tpu.dynamic_rotate %15 by %c240_i32_54 dim 1 : vector<16x256xf32>, i32 -> vector<16x256xf32>
    %132 = vector.broadcast %22 : vector<1x1xf32> to vector<16x256xf32>
    %133 = arith.mulf %131, %132 : vector<16x256xf32>
    %c16_i32_55 = arith.constant 16 : i32
    %134 = tpu.dynamic_rotate %15 by %c16_i32_55 dim 1 : vector<16x256xf32>, i32 -> vector<16x256xf32>
    %135 = vector.broadcast %24 : vector<1x1xf32> to vector<16x256xf32>
    %136 = arith.mulf %134, %135 : vector<16x256xf32>
    %137 = arith.addf %133, %136 : vector<16x256xf32>
    %c7 = arith.constant 7 : index
    %c0_56 = arith.constant 0 : index
    %c0_57 = arith.constant 0 : index
    %138 = vector.load %arg5[%c7, %c0_56, %c0_57] : memref<9x1x256xf32, #tpu.memory_space<vmem>>, vector<1x1x256xf32>
    %139 = vector.shape_cast %138 : vector<1x1x256xf32> to vector<1x256xf32>
    %140 = vector.broadcast %139 : vector<1x256xf32> to vector<16x256xf32>
    %141 = arith.mulf %137, %140 : vector<16x256xf32>
    %c7_58 = arith.constant 7 : index
    %c0_59 = arith.constant 0 : index
    %c0_60 = arith.constant 0 : index
    %142 = vector.load %arg4[%c7_58, %c0_59, %c0_60] : memref<9x16x1xf32, #tpu.memory_space<vmem>>, vector<1x16x1xf32>
    %143 = vector.shape_cast %142 : vector<1x16x1xf32> to vector<16x1xf32>
    %144 = vector.broadcast %143 : vector<16x1xf32> to vector<16x256xf32>
    %145 = arith.mulf %141, %144 : vector<16x256xf32>
    %146 = arith.addf %130, %145 : vector<16x256xf32>
    %c239_i32_61 = arith.constant 239 : i32
    %147 = tpu.dynamic_rotate %15 by %c239_i32_61 dim 1 : vector<16x256xf32>, i32 -> vector<16x256xf32>
    %148 = vector.broadcast %22 : vector<1x1xf32> to vector<16x256xf32>
    %149 = arith.mulf %147, %148 : vector<16x256xf32>
    %c17_i32_62 = arith.constant 17 : i32
    %150 = tpu.dynamic_rotate %15 by %c17_i32_62 dim 1 : vector<16x256xf32>, i32 -> vector<16x256xf32>
    %151 = vector.broadcast %24 : vector<1x1xf32> to vector<16x256xf32>
    %152 = arith.mulf %150, %151 : vector<16x256xf32>
    %153 = arith.addf %149, %152 : vector<16x256xf32>
    %c8 = arith.constant 8 : index
    %c0_63 = arith.constant 0 : index
    %c0_64 = arith.constant 0 : index
    %154 = vector.load %arg5[%c8, %c0_63, %c0_64] : memref<9x1x256xf32, #tpu.memory_space<vmem>>, vector<1x1x256xf32>
    %155 = vector.shape_cast %154 : vector<1x1x256xf32> to vector<1x256xf32>
    %156 = vector.broadcast %155 : vector<1x256xf32> to vector<16x256xf32>
    %157 = arith.mulf %153, %156 : vector<16x256xf32>
    %c8_65 = arith.constant 8 : index
    %c0_66 = arith.constant 0 : index
    %c0_67 = arith.constant 0 : index
    %158 = vector.load %arg4[%c8_65, %c0_66, %c0_67] : memref<9x16x1xf32, #tpu.memory_space<vmem>>, vector<1x16x1xf32>
    %159 = vector.shape_cast %158 : vector<1x16x1xf32> to vector<16x1xf32>
    %160 = vector.broadcast %159 : vector<16x1xf32> to vector<16x256xf32>
    %161 = arith.mulf %157, %160 : vector<16x256xf32>
    %162 = arith.addf %146, %161 : vector<16x256xf32>
    %c0_68 = arith.constant 0 : index
    %c0_69 = arith.constant 0 : index
    %163 = vector.load %arg6[%c0_68, %c0_69] : memref<16x1xf32, #tpu.memory_space<vmem>>, vector<16x1xf32>
    %164 = vector.broadcast %163 : vector<16x1xf32> to vector<16x256xf32>
    %165 = arith.addf %162, %164 : vector<16x256xf32>
    %cst_70 = arith.constant 3.000000e+00 : f32
    %166 = vector.broadcast %cst_70 : f32 to vector<16x256xf32>
    %167 = arith.addf %165, %166 : vector<16x256xf32>
    %cst_71 = arith.constant 0.000000e+00 : f32
    %cst_72 = arith.constant 6.000000e+00 : f32
    %168 = vector.broadcast %cst_71 : f32 to vector<16x256xf32>
    %169 = arith.maximumf %168, %167 : vector<16x256xf32>
    %170 = vector.broadcast %cst_72 : f32 to vector<16x256xf32>
    %171 = arith.minimumf %170, %169 : vector<16x256xf32>
    %172 = arith.mulf %165, %171 : vector<16x256xf32>
    %cst_73 = arith.constant 0.166666672 : f32
    %173 = vector.broadcast %cst_73 : f32 to vector<16x256xf32>
    %174 = arith.mulf %172, %173 : vector<16x256xf32>
    %c0_74 = arith.constant 0 : index
    %c0_75 = arith.constant 0 : index
    %175 = vector.load %arg7[%c0_74, %c0_75] : memref<8x16xbf16, #tpu.memory_space<vmem>>, vector<8x16xbf16>
    %176 = arith.truncf %174 : vector<16x256xf32> to vector<16x256xbf16>
    %cst_76 = arith.constant dense<0.000000e+00> : vector<8x256xf32>
    %177 = tpu.matmul %175, %176, %cst_76 {dimension_numbers = #tpu.dot_dimension_numbers<[1], [0], [0], [1], [0, 0, 1, 1], [], []>} : vector<8x16xbf16>, vector<16x256xbf16>, vector<8x256xf32> -> vector<8x256xf32>
    %c0_77 = arith.constant 0 : index
    %c0_78 = arith.constant 0 : index
    %178 = vector.load %arg8[%c0_77, %c0_78] : memref<8x1xf32, #tpu.memory_space<vmem>>, vector<8x1xf32>
    %179 = vector.broadcast %178 : vector<8x1xf32> to vector<8x256xf32>
    %180 = arith.addf %177, %179 : vector<8x256xf32>
    %cst_79 = arith.constant dense<0.000000e+00> : vector<8xf32>
    %181 = vector.multi_reduction <add>, %180, %cst_79 [1] : vector<8x256xf32> to vector<8xf32>
    %182 = vector.shape_cast %181 : vector<8xf32> to vector<8x1xf32>
    %cst_80 = arith.constant 2.560000e+02 : f32
    %183 = vector.broadcast %cst_80 : f32 to vector<8x1xf32>
    %184 = arith.divf %182, %183 : vector<8x1xf32>
    %c0_81 = arith.constant 0 : index
    %c0_82 = arith.constant 0 : index
    %185 = vector.load %arg9[%c0_81, %c0_82] : memref<2x8xf32, #tpu.memory_space<vmem>>, vector<2x8xf32>
    %cst_83 = arith.constant dense<0.000000e+00> : vector<2x1xf32>
    %186 = tpu.matmul %185, %184, %cst_83 {dimension_numbers = #tpu.dot_dimension_numbers<[1], [0], [0], [1], [0, 0, 1, 1], [], []>} : vector<2x8xf32>, vector<8x1xf32>, vector<2x1xf32> -> vector<2x1xf32>
    %c0_84 = arith.constant 0 : index
    %c0_85 = arith.constant 0 : index
    %187 = vector.load %arg10[%c0_84, %c0_85] : memref<2x1xf32, #tpu.memory_space<vmem>>, vector<2x1xf32>
    %188 = arith.addf %186, %187 : vector<2x1xf32>
    %cst_86 = arith.constant 0.000000e+00 : f32
    %189 = vector.broadcast %cst_86 : f32 to vector<2x1xf32>
    %190 = arith.maximumf %188, %189 : vector<2x1xf32>
    %c0_87 = arith.constant 0 : index
    %c0_88 = arith.constant 0 : index
    %191 = vector.load %arg11[%c0_87, %c0_88] : memref<8x2xf32, #tpu.memory_space<vmem>>, vector<8x2xf32>
    %cst_89 = arith.constant dense<0.000000e+00> : vector<8x1xf32>
    %192 = tpu.matmul %191, %190, %cst_89 {dimension_numbers = #tpu.dot_dimension_numbers<[1], [0], [0], [1], [0, 0, 1, 1], [], []>} : vector<8x2xf32>, vector<2x1xf32>, vector<8x1xf32> -> vector<8x1xf32>
    %c0_90 = arith.constant 0 : index
    %c0_91 = arith.constant 0 : index
    %193 = vector.load %arg12[%c0_90, %c0_91] : memref<8x1xf32, #tpu.memory_space<vmem>>, vector<8x1xf32>
    %194 = arith.addf %192, %193 : vector<8x1xf32>
    %195 = arith.negf %194 : vector<8x1xf32>
    %196 = math.exp %195 : vector<8x1xf32>
    %cst_92 = arith.constant 1.000000e+00 : f32
    %197 = vector.broadcast %cst_92 : f32 to vector<8x1xf32>
    %198 = arith.addf %197, %196 : vector<8x1xf32>
    %199 = arith.divf %197, %198 : vector<8x1xf32>
    %200 = vector.broadcast %199 : vector<8x1xf32> to vector<8x256xf32>
    %201 = arith.mulf %180, %200 : vector<8x256xf32>
    %c0_93 = arith.constant 0 : index
    %c0_94 = arith.constant 0 : index
    %202 = vector.load %arg13[%c0_93, %c0_94] : memref<8x8xbf16, #tpu.memory_space<vmem>>, vector<8x8xbf16>
    %cst_95 = arith.constant dense<0.000000e+00> : vector<8x256xf32>
    %203 = tpu.matmul %202, %1, %cst_95 {dimension_numbers = #tpu.dot_dimension_numbers<[1], [0], [0], [1], [0, 0, 1, 1], [], []>} : vector<8x8xbf16>, vector<8x256xbf16>, vector<8x256xf32> -> vector<8x256xf32>
    %204 = arith.addf %201, %203 : vector<8x256xf32>
    %c0_96 = arith.constant 0 : index
    %c0_97 = arith.constant 0 : index
    %205 = vector.load %arg14[%c0_96, %c0_97] : memref<8x1xf32, #tpu.memory_space<vmem>>, vector<8x1xf32>
    %206 = vector.broadcast %205 : vector<8x1xf32> to vector<8x256xf32>
    %207 = arith.addf %204, %206 : vector<8x256xf32>
    %c0_98 = arith.constant 0 : index
    %c0_99 = arith.constant 0 : index
    %c0_100 = arith.constant 0 : index
    %208 = vector.load %arg15[%c0_98, %c0_99, %c0_100] : memref<1x8x256xf32, #tpu.memory_space<vmem>>, vector<1x8x256xf32>
    %209 = vector.shape_cast %208 : vector<1x8x256xf32> to vector<8x256xf32>
    %210 = vector.shape_cast %207 : vector<8x256xf32> to vector<1x8x256xf32>
    tpu.vector_store %arg15[%c0_98, %c0_99, %c0_100], %210 {strides = array<i32>} : memref<1x8x256xf32, #tpu.memory_space<vmem>>, vector<1x8x256xf32>,
    return
  }
  func.func @transform_0(%arg0: i32) -> (i32, i32, i32) {
    %c0_i32 = arith.constant 0 : i32
    %c0_i32_0 = arith.constant 0 : i32
    %c0_i32_1 = arith.constant 0 : i32
    return %arg0, %c0_i32, %c0_i32_0 : i32, i32, i32
  }
  func.func @transform_1(%arg0: i32) -> (i32, i32) {
    %c0_i32 = arith.constant 0 : i32
    %c0_i32_0 = arith.constant 0 : i32
    %c0_i32_1 = arith.constant 0 : i32
    return %c0_i32, %c0_i32_0 : i32, i32
  }
  func.func @transform_2(%arg0: i32) -> (i32, i32) {
    %c0_i32 = arith.constant 0 : i32
    %c0_i32_0 = arith.constant 0 : i32
    %c0_i32_1 = arith.constant 0 : i32
    return %c0_i32, %c0_i32_0 : i32, i32
  }
  func.func @transform_3(%arg0: i32) -> (i32, i32, i32) {
    %c0_i32 = arith.constant 0 : i32
    %c0_i32_0 = arith.constant 0 : i32
    %c0_i32_1 = arith.constant 0 : i32
    %c0_i32_2 = arith.constant 0 : i32
    return %c0_i32, %c0_i32_0, %c0_i32_1 : i32, i32, i32
  }
  func.func @transform_4(%arg0: i32) -> (i32, i32, i32) {
    %c0_i32 = arith.constant 0 : i32
    %c0_i32_0 = arith.constant 0 : i32
    %c0_i32_1 = arith.constant 0 : i32
    %c0_i32_2 = arith.constant 0 : i32
    return %c0_i32, %c0_i32_0, %c0_i32_1 : i32, i32, i32
  }
  func.func @transform_5(%arg0: i32) -> (i32, i32) {
    %c0_i32 = arith.constant 0 : i32
    %c0_i32_0 = arith.constant 0 : i32
    %c0_i32_1 = arith.constant 0 : i32
    return %c0_i32, %c0_i32_0 : i32, i32
  }
  func.func @transform_6(%arg0: i32) -> (i32, i32) {
    %c0_i32 = arith.constant 0 : i32
    %c0_i32_0 = arith.constant 0 : i32
    %c0_i32_1 = arith.constant 0 : i32
    return %c0_i32, %c0_i32_0 : i32, i32
  }
  func.func @transform_7(%arg0: i32) -> (i32, i32) {
    %c0_i32 = arith.constant 0 : i32
    %c0_i32_0 = arith.constant 0 : i32
    %c0_i32_1 = arith.constant 0 : i32
    return %c0_i32, %c0_i32_0 : i32, i32
  }
  func.func @transform_8(%arg0: i32) -> (i32, i32) {
    %c0_i32 = arith.constant 0 : i32
    %c0_i32_0 = arith.constant 0 : i32
    %c0_i32_1 = arith.constant 0 : i32
    return %c0_i32, %c0_i32_0 : i32, i32
  }
  func.func @transform_9(%arg0: i32) -> (i32, i32) {
    %c0_i32 = arith.constant 0 : i32
    %c0_i32_0 = arith.constant 0 : i32
    %c0_i32_1 = arith.constant 0 : i32
    return %c0_i32, %c0_i32_0 : i32, i32
  }
  func.func @transform_10(%arg0: i32) -> (i32, i32) {
    %c0_i32 = arith.constant 0 : i32
    %c0_i32_0 = arith.constant 0 : i32
    %c0_i32_1 = arith.constant 0 : i32
    return %c0_i32, %c0_i32_0 : i32, i32
  }
  func.func @transform_11(%arg0: i32) -> (i32, i32) {
    %c0_i32 = arith.constant 0 : i32
    %c0_i32_0 = arith.constant 0 : i32
    %c0_i32_1 = arith.constant 0 : i32
    return %c0_i32, %c0_i32_0 : i32, i32
  }
  func.func @transform_12(%arg0: i32) -> (i32, i32) {
    %c0_i32 = arith.constant 0 : i32
    %c0_i32_0 = arith.constant 0 : i32
    %c0_i32_1 = arith.constant 0 : i32
    return %c0_i32, %c0_i32_0 : i32, i32
  }
  func.func @transform_13(%arg0: i32) -> (i32, i32) {
    %c0_i32 = arith.constant 0 : i32
    %c0_i32_0 = arith.constant 0 : i32
    %c0_i32_1 = arith.constant 0 : i32
    return %c0_i32, %c0_i32_0 : i32, i32
  }
  func.func @transform_14(%arg0: i32) -> (i32, i32, i32) {
    %c0_i32 = arith.constant 0 : i32
    %c0_i32_0 = arith.constant 0 : i32
    %c0_i32_1 = arith.constant 0 : i32
    return %arg0, %c0_i32, %c0_i32_0 : i32, i32, i32
  }
}

</mosaic_0001>

<bundles_post_ra>
// kernel: tpu_custom_call.1
= control target key start
LH: loop header
LB: loop body
LE: loop exit
PB: predicated region body
PF: predicated region fallthrough
CT: control target
= control target key end

     0   :  { %s2420_s0 = inlined_call_operand.vmem [shape: bf16[2,8,256], index: 0, kind: input, shape index: {}]   ;;  %s2421_s1 = inlined_call_operand.vmem [shape: bf16[16,8], index: 1, kind: input, shape index: {}]   ;;  %s2422_s2 = inlined_call_operand.vmem [shape: f32[16,1], index: 2, kind: input, shape index: {}]   ;;  %s2423_s3 = inlined_call_operand.vmem [shape: f32[9,16,1], index: 3, kind: input, shape index: {}]   ;;  %s2424_s4 = inlined_call_operand.vmem [shape: f32[9,1,256], index: 4, kind: input, shape index: {}]   ;;  %s2425_s5 = inlined_call_operand.vmem [shape: f32[16,1], index: 5, kind: input, shape index: {}]   ;;  %s2426_s6 = inlined_call_operand.vmem [shape: bf16[8,16], index: 6, kind: input, shape index: {}]   ;;  %s2427_s7 = inlined_call_operand.vmem [shape: f32[8,1], index: 7, kind: input, shape index: {}]   ;;  %s2428_s8 = inlined_call_operand.vmem [shape: f32[2,8], index: 8, kind: input, shape index: {}]   ;;  %s2429_s9 = inlined_call_operand.vmem [shape: f32[2,1], index: 9, kind: input, shape index: {}]   ;;  %s2430_s10 = inlined_call_operand.vmem [shape: f32[8,2], index: 10, kind: input, shape index: {}]   ;;  %s2431_s11 = inlined_call_operand.vmem [shape: f32[8,1], index: 11, kind: input, shape index: {}]   ;;  %s2432_s12 = inlined_call_operand.vmem [shape: bf16[8,8], index: 12, kind: input, shape index: {}]   ;;  %s2433_s13 = inlined_call_operand.vmem [shape: f32[8,1], index: 13, kind: input, shape index: {}]   ;;  %s2434_s14 = inlined_call_operand.hbm [shape: f32[2,8,256], index: 14, kind: output, shape index: {}]  }
   0x1   :  { %2444 = sst [smem:[#allocation16_spill]] %s2420_s0 }
   0x2   :  { %2445 = sst [smem:[#allocation17_spill]] %s2422_s2 }
   0x3   :  { %19 = vsyncpa [#allocation3], 0 }
   0x4   :  { %21 = vsyncpa [#allocation3 + $0x1], 0  ;;  %s1798_s29 = smov 0   ;;  %s1800_s30 = smov 0  }
   0x5   :  { %s1802_s15 = smov 0   ;;  %s1804_s16 = smov 0  }
   0x6 LB: > { %2446 = sst [smem:[#allocation5_spill]] %s1705_s15  ;;  %s1819_s17 = sadd.s32 4294967295, %s1709_s16   ;;  %s1709_s16 = sphi %s1804_s16, %s2476_s16   ;;  %s1705_s15 = sphi %s1802_s15, %s2473_s15   ;;  %s1701_s30 = sphi %s1800_s30, %s2475_s30   ;;  %s1697_s29 = sphi %s1798_s29, %s2474_s29  }
   0x7   : > { %s1521_s18 = sadd.s32 4294967294, %s1709_s16   ;;  %s1823_s19 = sadd.s32 1, %s1709_s16  }
   0x8   : > { %s333_s20 = sadd.s32 1, %s1705_s15  ;;  %s330_s21 = ssub.s32 %s1709_s16, %s1823_s19 }
   0x9   : > { %p343_p0 = scmp.ne.s32.totalorder %s1705_s15, %s1701_s30  ;;  %p331_p1 = scmp.eq.s32.totalorder %s330_s21, 0 }
   0xa   : > { %p344_p2 = scmp.eq.s32.totalorder %s1819_s17, 1  ;;  %p349_p3 = scmp.ne.s32.totalorder %s1701_s30, %s1697_s29 }
   0xb   : > { %p350_p4 = scmp.eq.s32.totalorder %s1521_s18, 1  ;;  %p1524_p7 = scmp.ge.s32.totalorder %s1709_s16, 1 }
   0xc   : > { %s1834_s22 = scalar_select %p331_p1, %s1705_s15, %s333_s20  }
   0xd   : > { %p1836_p5 = por %p344_p2, %p343_p0  ;;  %p1840_p6 = por %p350_p4, %p349_p3 }
   0xe   : > { %2447 = sst [smem:[#allocation6_spill]] %s1834_s22  ;;  %p415_p8 = scmp.lt.s32.totalorder %s1709_s16, 3 }
  0x10   : > { %p416_p9 = pnand %p1524_p7, %p415_p8 }
  0x12   : > { %419 = sbr.rel (%p416_p9) target bundleno = 1378 (0x562), region = 76 }
  0x17   : > { %p461_p10 = scmp.lt.s32.totalorder %s1819_s17, 1  ;;  %v566_v0 = vlaneseq  ;;  %v1711_v1 = vmov 0   ;;  %s2450_s2 = sld [smem:[#allocation17_spill]]  ;;  %vm496_vm0 = vcmask 1043456   ;;  %v641_v9 = vld [vmem:[%s2423_s3] sm:$0xff]  ;;  %v642_v12 = vld [vmem:[%s2423_s3 + $0x8] sm:$0xff] }
  0x18   : > { %535 = vmatprep.mubr.bf16.mxu0 %v1711_v1  ;;  %1640 = vset.pattern.permute.xlu0 %v1711_v1  ;;  %s2436_s21 = smov 1   ;;  %s2451_s0 = sld [smem:[#allocation16_spill]]  ;;  %v1644_v11 = vld [vmem:[%s2421_s1] sm:$0xff]   ;;  %vm492_vm1 = vcmask 64512   ;;  %v1535_v13 = vld [vmem:[%s2423_s3 + $0x10] sm:$0xff]  ;;  %v1536_v14 = vld [vmem:[%s2423_s3 + $0x18] sm:$0xff] }
  0x19   : > { %s462_s27 = scalar_select %p461_p10, %s1819_s17, 1  ;;  %v1852_v3 = vand.u32 127, %v566_v0  ;;  %1641 = vset.pattern.permute.xlu1 %v1711_v1  ;;  %1207 = vmatprep.mubr.bf16.mxu1 %v1711_v1  ;;  %v1538_v15 = vld [vmem:[%s2423_s3 + $0x20] sm:$0xff]  ;;  %v1539_v16 = vld [vmem:[%s2423_s3 + $0x28] sm:$0xff]  ;;  %v1541_v17 = vld [vmem:[%s2423_s3 + $0x30] sm:$0xff]  ;;  %v2438_v26 = vmov 0.0  }
  0x1a   : > { %v1542_v18 = vld [vmem:[%s2423_s3 + $0x38] sm:$0xff]  ;;  %v1544_v19 = vld [vmem:[%s2423_s3 + $0x40] sm:$0xff]  ;;  %v1545_v20 = vld [vmem:[%s2423_s3 + $0x48] sm:$0xff]  ;;  %v628_v45 = vshrl.u32 %v566_v0, 7  ;;  %s1714_s15 = smov 17   ;;  %s1715_s26 = smov 111  }
  0x1b   : > { %s1570_s20 = sshll.u32 %s462_s27, 3  ;;  %569 = vrot.lane.b32.xlu1 %v1852_v3, %s2436_s21  ;;  %v568_v5 = vadd.s32 128, %v1852_v3  ;;  %v1547_v21 = vld [vmem:[%s2423_s3 + $0x50] sm:$0xff]  ;;  %v1548_v22 = vld [vmem:[%s2423_s3 + $0x58] sm:$0xff]  ;;  %vm573_vm2 = vcmp.lt.s32.totalorder %v1852_v3, 1  ;;  %s1716_s28 = smov 16  }
  0x1c   : > { %v1919_v53 = vsub.s32 0, %v628_v45  ;;  %v1543_v54 = vld [vmem:[%s2424_s4 + $0x8] sm:$0x3]  ;;  %v1926_v57 = vsub.s32 1, %v628_v45  ;;  %s1718_s27 = smov 15   ;;  %s1719_s18 = smov 113  }
  0x1d   : > { %v470_v2 = vld [vmem:[%s2450_s2] sm:$0xff]  ;;  %v471_v4 = vld [vmem:[%s2450_s2 + $0x8] sm:$0xff]  ;;  %s1717_s2 = smov 112   ;;  %s2454_s25 = smov 1   ;;  %vm587_vm4 = vcmp.lt.s32.totalorder %v1852_v3, 17  ;;  %vm608_vm5 = vcmp.lt.s32.totalorder %v1852_v3, 111 }
  0x1e   : > { %474 = vperm.xlu0 %1640, %v470_v2   ;;  %s465_s22 = scalar_lea.vmem %s2451_s0, %s1570_s20  ;;  %v1929_v60 = vrot.slane %v1543_v54, %v1919_v53  ;;  %v1935_v63 = vrot.slane %v1543_v54, %v1926_v57  ;;  %vm669_vm6 = vcmp.lt.s32.totalorder %v1852_v3, 16  ;;  %vm686_vm7 = vcmp.lt.s32.totalorder %v1852_v3, 112 }
  0x1f   : > { %v467_v6 = vld [vmem:[%s465_s22] sm:$0xff]  ;;  %571 = vrot.lane.b32.xlu1 %v568_v5, %s2436_s21  ;;  %s1720_s22 = smov 127   ;;  %vm745_vm8 = vcmp.lt.s32.totalorder %v1852_v3, 15  ;;  %vm762_vm9 = vcmp.lt.s32.totalorder %v1852_v3, 113  ;;  %vm837_vm10 = vcmp.lt.s32.totalorder %v1852_v3, 127  ;;  %vm1171_vm11 = vcmask 130048  }
  0x20   : > { %v1530_v7 = vcombine.high %v467_v6, %v467_v6  ;;  %v1529_v8 = vcombine.low %v467_v6, %v467_v6  ;;  %vm1721_vm12 = vmmov 0   ;;  %vm1303_vm13 = vcmask 1041408  }
  0x21   : > { %vm1299_vm14 = vcmask 15360  }
  0x22   : > { %479 = vperm.xlu0 %1640, %v471_v4   ;;  %1531 = vmatprep.subr.msk.bf16.mxu0 %vm496_vm0, %v1530_v7  ;;  %v498_v10 = vsel %vm496_vm0, %v1529_v8, 0 }
  0x23   : > { %518 = vmatpush1.bf16.msra.mxu0 %v498_v10  ;;  %650 = vperm.xlu1 %1641, %v642_v12   ;;  %v1551_v12 = vld [vmem:[%s2423_s3 + $0x68] sm:$0xff] }
  0x24   : > { %1563 = vmatprep.subr.msk.bf16.mxu0 %vm496_vm0, %v1530_v7 }
  0x26   : > { %645 = vperm.xlu0 %1640, %v641_v9   ;;  %1532 = vmatmul.mubr.msk.bf16.vlgmr.msra.gmra.mxu0 %vm492_vm1, %v1644_v11  ;;  %v1550_v11 = vld [vmem:[%s2423_s3 + $0x60] sm:$0xff] }
  0x27   : > { %1409 = vmatpush1.bf16.msra.mxu0 %v498_v10  ;;  %1426 = vmatprep.mubr.bf16.mxu0 %v1711_v1 }
  0x28   : > { %726 = vperm.xlu1 %1641, %v1536_v14   ;;  %v1554_v14 = vld [vmem:[%s2423_s3 + $0x78] sm:$0xff] }
  0x2a   : > { %721 = vperm.xlu0 %1640, %v1535_v13   ;;  %v1553_v13 = vld [vmem:[%s2423_s3 + $0x70] sm:$0xff] }
  0x2c   : > { %802 = vperm.xlu1 %1641, %v1539_v16   ;;  %v1557_v16 = vld [vmem:[%s2423_s3 + $0x88] sm:$0xff] }
  0x2e   : > { %797 = vperm.xlu0 %1640, %v1538_v15   ;;  %v1556_v15 = vld [vmem:[%s2423_s3 + $0x80] sm:$0xff] }
  0x30   : > { %877 = vperm.xlu1 %1641, %v1542_v18   ;;  %v1127_v18 = vld [vmem:[%s2425_s5 + $0x8] sm:$0xff] }
  0x32   : > { %872 = vperm.xlu0 %1640, %v1541_v17   ;;  %v1126_v17 = vld [vmem:[%s2425_s5] sm:$0xff] }
  0x34   : > { %915 = vperm.xlu1 %1641, %v1545_v20  }
  0x36   : > { %910 = vperm.xlu0 %1640, %v1544_v19   ;;  %v1165_v19 = vld [vmem:[%s2427_s7] sm:$0xff] }
  0x38   : > { %965 = vperm.xlu1 %1641, %v1548_v22  }
  0x3a   : > { %960 = vperm.xlu0 %1640, %v1547_v21  }
  0x8d   : > { %v570_v23 = vpop.permute.xlu1 %569 }
  0x91   : > { %v572_v24 = vpop.permute.xlu1 %571 }
  0x92   : > { %v574_v25 = vsel %vm573_vm2, %v572_v24, %v570_v23 }
  0x93   : > { %vm575_vm3 = vcmp.eq.s32.totalorder %v574_v25, 255 }
  0x94   : > { %v1533_v27 = vsel %vm575_vm3, 1.0, %v2438_v26 }
  0x95   : > { %1586 = vpush %v1533_v27  ;;  %v578_v28 = vsub.f32 1.0, %v1533_v27 }
  0x97   : > { %1588 = vpush %v578_v28 }
  0x99   : > { %v475_v30 = vpop.permute.xlu0 %474 }
  0x9d   : > { %v480_v35 = vpop.permute.xlu0 %479 }
  0x9e   : > { %v1908_v29 = vpop.permute.xlu1 %650 }
  0xa1   : > { %v1985_v20 = vpop.permute.xlu0 %645 }
  0xa3   : > { %v1910_v31 = vpop.permute.xlu1 %726 }
  0xa5   : > { %v1987_v21 = vpop.permute.xlu0 %721 }
  0xa7   : > { %v1912_v38 = vpop.permute.xlu1 %802 }
  0xa9   : > { %v1989_v22 = vpop.permute.xlu0 %797 }
  0xab   : > { %v1915_v49 = vpop.permute.xlu1 %877 }
  0xad   : > { %v1991_v23 = vpop.permute.xlu0 %872 }
  0xaf   : > { %v916_v61 = vpop.permute.xlu1 %915 }
  0xb1   : > { %v911_v24 = vpop.permute.xlu0 %910 }
  0xb3   : > { %v1995_v27 = vpop.permute.xlu1 %965 }
  0xb5   : > { %v1993_v25 = vpop.permute.xlu0 %960 }
  0xc6   : > { %s1587_s0 = spop %1586 }
  0xc7   : > { %v2035_v54 = vstv %s1587_s0  ;;  %s1571_s0 = sshll.u32 %s1819_s17, 8  ;;  %s1722_s17 = smov [#allocation2]  }
  0xe6   : > { %v537_v32 = vpop.f32.mrf.mxu0 }
  0xe7   : > { %v538_v33 = vadd.f32 %v537_v32, %v475_v30 }
  0xe8   : > { %v539_v34 = vpop.f32.mrf.mxu0 }
  0xe9   : > { %v546_v36 = vadd.f32 3.0, %v538_v33  ;;  %v540_v5 = vadd.f32 %v539_v34, %v475_v30 }
  0xea   : > { %v541_v37 = vpop.f32.mrf.mxu0 }
  0xeb   : > { %v550_v39 = vmax.f32 %v546_v36, 0.0  ;;  %v542_v40 = vadd.f32 %v541_v37, %v480_v35  ;;  %v547_v6 = vadd.f32 3.0, %v540_v5 }
  0xec   : > { %v543_v41 = vpop.f32.mrf.mxu0 }
  0xed   : > { %v554_v42 = vmin.f32 %v550_v39, 6.0  ;;  %v548_v43 = vadd.f32 3.0, %v542_v40  ;;  %v544_v44 = vadd.f32 %v543_v41, %v480_v35  ;;  %v551_v7 = vmax.f32 %v547_v6, 0.0 }
  0xef   : > { %v558_v46 = vmul.f32 %v554_v42, %v538_v33  ;;  %v552_v47 = vmax.f32 %v548_v43, 0.0  ;;  %v549_v48 = vadd.f32 3.0, %v544_v44  ;;  %v555_v8 = vmin.f32 %v551_v7, 6.0 }
  0xf1   : > { %v1917_v50 = vmul.f32 0.16666667, %v558_v46  ;;  %v556_v51 = vmin.f32 %v552_v47, 6.0  ;;  %v553_v52 = vmax.f32 %v549_v48, 0.0  ;;  %v559_v9 = vmul.f32 %v555_v8, %v540_v5  ;;  %v625_v48 = vld [vmem:[%s2424_s4] sm:$0x3] }
  0xf2   : > { %v1546_v8 = vld [vmem:[%s2424_s4 + $0xa] sm:$0x3] }
  0xf3   : > { %v560_v55 = vmul.f32 %v556_v51, %v542_v40  ;;  %v557_v56 = vmin.f32 %v553_v52, 6.0  ;;  %579 = vrot.lane.b32.xlu0 %v1917_v50, %s1714_s15  ;;  %v563_v10 = vmul.f32 0.16666667, %v559_v9  ;;  %v1534_v51 = vld [vmem:[%s2424_s4 + $0x2] sm:$0x3] }
  0xf4   : > { %v2065_v5 = vrot.slane %v1534_v51, %v1926_v57  ;;  %v1555_v9 = vld [vmem:[%s2424_s4 + $0x10] sm:$0x3] }
  0xf5   : > { %v564_v58 = vmul.f32 0.16666667, %v560_v55  ;;  %v561_v59 = vmul.f32 %v557_v56, %v544_v44  ;;  %v901_v44 = vmul.f32 %v1929_v60, %v1917_v50  ;;  %v902_v45 = vmul.f32 %v1935_v63, %v563_v10 }
  0xf7   : > { %v565_v62 = vmul.f32 0.16666667, %v561_v59  ;;  %581 = vrot.lane.b32.xlu1 %v564_v58, %s1714_s15  ;;  %600 = vrot.lane.b32.xlu0 %v1917_v50, %s1715_s26  ;;  %v903_v0 = vmul.f32 %v1929_v60, %v564_v58  ;;  %v2033_v52 = vmul.f32 %v911_v24, %v901_v44  ;;  %v2040_v56 = vmul.f32 %v911_v24, %v902_v45  ;;  %v1552_v59 = vld [vmem:[%s2424_s4 + $0xe] sm:$0x3] }
  0xf8   : > { %v2102_v24 = vrot.slane %v1546_v8, %v1919_v53  ;;  %v2105_v44 = vrot.slane %v1546_v8, %v1926_v57  ;;  %v2108_v45 = vrot.slane %v1555_v9, %v1919_v53 }
  0xf9   : > { %v904_v1 = vmul.f32 %v1935_v63, %v565_v62  ;;  %v1939_v2 = vmul.f32 %v916_v61, %v903_v0  ;;  %v2055_v63 = vrot.slane %v625_v48, %v1926_v57  ;;  %v1540_v0 = vld [vmem:[%s2424_s4 + $0x6] sm:$0x3] }
  0xfa   : > { %2457 = vst [vmem:[#allocation11_spill] sm:$0xff] %v2108_v45 }
  0xfb   : > { %2452 = vst [vmem:[#allocation7_spill] sm:$0xff] %v1939_v2  ;;  %v1941_v4 = vmul.f32 %v916_v61, %v904_v1  ;;  %602 = vrot.lane.b32.xlu1 %v564_v58, %s1715_s26  ;;  %661 = vrot.lane.b32.xlu0 %v1917_v50, %s1716_s28  ;;  %v2062_v1 = vrot.slane %v1534_v51, %v1919_v53 }
  0xfd   : > { %2453 = vst [vmem:[#allocation8_spill] sm:$0xff] %v1941_v4 }
  0xff   : > { %663 = vrot.lane.b32.xlu1 %v564_v58, %s1716_s28  ;;  %678 = vrot.lane.b32.xlu0 %v1917_v50, %s1717_s2 }
 0x103   : > { %680 = vrot.lane.b32.xlu1 %v564_v58, %s1717_s2  ;;  %737 = vrot.lane.b32.xlu0 %v1917_v50, %s1718_s27 }
 0x107   : > { %739 = vrot.lane.b32.xlu1 %v564_v58, %s1718_s27  ;;  %754 = vrot.lane.b32.xlu0 %v1917_v50, %s1719_s18 }
 0x10b   : > { %756 = vrot.lane.b32.xlu1 %v564_v58, %s1719_s18  ;;  %813 = vrot.lane.b32.xlu0 %v1917_v50, %s2454_s25 }
 0x10f   : > { %815 = vrot.lane.b32.xlu1 %v564_v58, %s2454_s25  ;;  %829 = vrot.lane.b32.xlu0 %v1917_v50, %s1720_s22  ;;  %v1537_v50 = vld [vmem:[%s2424_s4 + $0x4] sm:$0x3] }
 0x110   : > { %v2068_v6 = vrot.slane %v1537_v50, %v1919_v53  ;;  %v2071_v7 = vrot.slane %v1537_v50, %v1926_v57 }
 0x113   : > { %831 = vrot.lane.b32.xlu1 %v564_v58, %s1720_s22  ;;  %583 = vrot.lane.b32.xlu0 %v563_v10, %s1714_s15  ;;  %v1549_v58 = vld [vmem:[%s2424_s4 + $0xc] sm:$0x3] }
 0x117   : > { %585 = vrot.lane.b32.xlu1 %v565_v62, %s1714_s15  ;;  %604 = vrot.lane.b32.xlu0 %v563_v10, %s1715_s26  ;;  %s2385_s15 = scalar_lea.hbm %s2434_s14, %s1571_s0 }
 0x11b   : > { %606 = vrot.lane.b32.xlu1 %v565_v62, %s1715_s26  ;;  %665 = vrot.lane.b32.xlu0 %v563_v10, %s1716_s28 }
 0x11f   : > { %667 = vrot.lane.b32.xlu1 %v565_v62, %s1716_s28  ;;  %682 = vrot.lane.b32.xlu0 %v563_v10, %s1717_s2 }
 0x123   : > { %684 = vrot.lane.b32.xlu1 %v565_v62, %s1717_s2  ;;  %741 = vrot.lane.b32.xlu0 %v563_v10, %s1718_s27  ;;  %s1653_s2 = sshll.u32 %s1722_s17, 4  ;;  %s1654_s2 = int_to_ptr.vmem [resolvable:$false] %s1653_s2 }
 0x127   : > { %743 = vrot.lane.b32.xlu1 %v565_v62, %s1718_s27  ;;  %758 = vrot.lane.b32.xlu0 %v563_v10, %s1719_s18  ;;  %s458_s27 = sand.u32 1, %s1701_s30  }
 0x128   : > { %s1448_s26 = scalar_lea.sflag [#allocation3], %s458_s27 }
 0x12b   : > { %760 = vrot.lane.b32.xlu1 %v565_v62, %s1719_s18  ;;  %817 = vrot.lane.b32.xlu0 %v563_v10, %s2454_s25  ;;  %s1589_s18 = spop %1588 }
 0x12c   : > { %v2037_v55 = vstv %s1589_s18 }
 0x12f   : > { %819 = vrot.lane.b32.xlu1 %v565_v62, %s2454_s25  ;;  %833 = vrot.lane.b32.xlu0 %v563_v10, %s1720_s22  ;;  %v2080_v10 = vrot.slane %v1549_v58, %v1919_v53  ;;  %s1525_s25 = sshll.u32 %s458_s27, 4 }
 0x130   : > { %s460_s18 = scalar_lea.vmem [#allocation2], %s1525_s25  ;;  %s1655_s25 = scalar_lea.vmem %s1654_s2, 512 }
 0x133   : > { %835 = vrot.lane.b32.xlu1 %v565_v62, %s1720_s22  ;;  %1010 = vperm.xlu0 %1640, %v1550_v11   ;;  %v2052_v62 = vrot.slane %v625_v48, %v1919_v53  ;;  %v2083_v11 = vrot.slane %v1549_v58, %v1926_v57  ;;  %v2111_v48 = vrot.slane %v1555_v9, %v1926_v57  ;;  %s1462_s22 = sshll.u32 %s460_s18, 4  ;;  %s1463_s22 = int_to_ptr.vmem [resolvable:$true] %s1462_s22 }
 0x134   : > { %s1649_s28 = scalar_lea.vmem %s1463_s22, 256  ;;  %p1656_p0 = scmp.lt.s32.totalorder %s1463_s22, %s1654_s2 }
 0x135   : > { %2458 = vst [vmem:[#allocation12_spill] sm:$0xff] %v2111_v48  ;;  %p1650_p11 = scmp.ne.s32.totalorder %s1463_s22, %s1649_s28  ;;  %p1657_p1 = scmp.lt.s32.totalorder %s1655_s25, %s1649_s28 }
 0x137   : > { %1015 = vperm.xlu1 %1641, %v1551_v12   ;;  %1060 = vperm.xlu0 %1640, %v1553_v13   ;;  %v2086_v12 = vrot.slane %v1552_v59, %v1919_v53  ;;  %v2089_v13 = vrot.slane %v1552_v59, %v1926_v57  ;;  %p1651_p12 = pnand %p1650_p11, %p1836_p5  ;;  %p1658_p2 = por %p1657_p1, %p1656_p0 }
 0x139   : > { %2455 = vst [vmem:[#allocation9_spill] sm:$0xff] %v2086_v12  ;;  %2456 = vst [vmem:[#allocation10_spill] sm:$0xff] %v2089_v13  ;;  %p1652_p13 = pneg %p1651_p12 }
 0x13b   : > { %1065 = vperm.xlu1 %1641, %v1554_v14   ;;  %1110 = vperm.xlu0 %1640, %v1556_v15   ;;  %p1659_p3 = pnand %p1658_p2, %p1652_p13 }
 0x13f   : > { %1115 = vperm.xlu1 %1641, %v1557_v16   ;;  %1130 = vperm.xlu0 %1640, %v1126_v17   ;;  %v2096_v16 = vrot.slane %v1540_v0, %v1919_v53  ;;  %v2099_v17 = vrot.slane %v1540_v0, %v1926_v57 }
 0x143   : > { %1135 = vperm.xlu1 %1641, %v1127_v18   ;;  %1168 = vperm.xlu0 %1640, %v1165_v19  }
 0x165   : > { %v580_v28 = vpop.permute.xlu0 %579 }
 0x169   : > { %v582_v30 = vpop.permute.xlu1 %581  ;;  %v601_v32 = vpop.permute.xlu0 %600 }
 0x16d   : > { %v1997_v33 = vpop.permute.xlu1 %602  ;;  %v1999_v34 = vpop.permute.xlu0 %661 }
 0x171   : > { %v2001_v35 = vpop.permute.xlu1 %663  ;;  %v2003_v36 = vpop.permute.xlu0 %678 }
 0x175   : > { %v2005_v37 = vpop.permute.xlu1 %680  ;;  %v2007_v39 = vpop.permute.xlu0 %737 }
 0x179   : > { %v2009_v40 = vpop.permute.xlu1 %739  ;;  %v2011_v41 = vpop.permute.xlu0 %754 }
 0x17d   : > { %v2013_v42 = vpop.permute.xlu1 %756  ;;  %v2015_v43 = vpop.permute.xlu0 %813 }
 0x181   : > { %v2020_v46 = vpop.permute.xlu1 %815  ;;  %v2022_v47 = vpop.permute.xlu0 %829 }
 0x185   : > { %v2048_v60 = vpop.permute.xlu1 %831  ;;  %v584_v61 = vpop.permute.xlu0 %583 }
 0x186   : > { %v588_v14 = vsel %vm587_vm4, %v580_v28, %v584_v61  ;;  %v590_v15 = vsel %vm587_vm4, %v584_v61, %v580_v28 }
 0x187   : > { %v596_v59 = vmul.f32 %v2035_v54, %v590_v15  ;;  %v597_v53 = vmul.f32 %v2035_v54, %v588_v14  ;;  %v1080_v61 = vmul.f32 %v2037_v55, %v590_v15  ;;  %v1081_v57 = vmul.f32 %v2037_v55, %v588_v14 }
 0x189   : > { %v586_v18 = vpop.permute.xlu1 %585  ;;  %v605_v19 = vpop.permute.xlu0 %604 }
 0x18a   : > { %v589_v28 = vsel %vm587_vm4, %v582_v30, %v586_v18  ;;  %v591_v51 = vsel %vm587_vm4, %v586_v18, %v582_v30  ;;  %v609_v50 = vsel %vm608_vm5, %v601_v32, %v605_v19  ;;  %v611_v58 = vsel %vm608_vm5, %v605_v19, %v601_v32 }
 0x18b   : > { %v617_v0 = vmul.f32 %v2037_v55, %v609_v50  ;;  %v618_v30 = vmul.f32 %v2037_v55, %v611_v58  ;;  %v1076_v8 = vmul.f32 %v609_v50, %v2035_v54  ;;  %v1077_v9 = vmul.f32 %v611_v58, %v2035_v54 }
 0x18c   : > { %v598_v32 = vmul.f32 %v2035_v54, %v591_v51  ;;  %v599_v18 = vmul.f32 %v2035_v54, %v589_v28  ;;  %v1082_v19 = vmul.f32 %v2037_v55, %v591_v51  ;;  %v1083_v15 = vmul.f32 %v2037_v55, %v589_v28 }
 0x18d   : > { %v607_v26 = vpop.permute.xlu1 %606  ;;  %v666_v14 = vpop.permute.xlu0 %665  ;;  %v621_v48 = vadd.f32 %v617_v0, %v596_v59  ;;  %v622_v45 = vadd.f32 %v618_v30, %v597_v53  ;;  %v2135_v2 = vadd.f32 %v1080_v61, %v1076_v8  ;;  %v2137_v4 = vadd.f32 %v1081_v57, %v1077_v9 }
 0x18e   : > { %v610_v50 = vsel %vm608_vm5, %v1997_v33, %v607_v26  ;;  %v612_v51 = vsel %vm608_vm5, %v607_v26, %v1997_v33  ;;  %v670_v28 = vsel %vm669_vm6, %v1999_v34, %v666_v14  ;;  %v672_v58 = vsel %vm669_vm6, %v666_v14, %v1999_v34 }
 0x18f   : > { %2459 = vst [vmem:[#allocation13_spill] sm:$0xff] %v2135_v2  ;;  %2460 = vst [vmem:[#allocation14_spill] sm:$0xff] %v2137_v4  ;;  %v637_v59 = vmul.f32 %v2052_v62, %v621_v48  ;;  %v638_v53 = vmul.f32 %v2055_v63, %v622_v45  ;;  %v619_v61 = vmul.f32 %v2037_v55, %v610_v50 }
 0x190   : > { %v620_v57 = vmul.f32 %v2037_v55, %v612_v51  ;;  %v1078_v0 = vmul.f32 %v610_v50, %v2035_v54  ;;  %v1079_v26 = vmul.f32 %v612_v51, %v2035_v54  ;;  %v674_v33 = vmul.f32 %v672_v58, %v2035_v54 }
 0x191   : > { %v675_v30 = vmul.f32 %v670_v28, %v2035_v54  ;;  %v668_v8 = vpop.permute.xlu1 %667  ;;  %v683_v9 = vpop.permute.xlu0 %682  ;;  %v653_v34 = vmul.f32 %v1985_v20, %v637_v59  ;;  %v654_v48 = vmul.f32 %v1985_v20, %v638_v53  ;;  %v623_v14 = vadd.f32 %v619_v61, %v598_v32 }
 0x192   : > { %v624_v45 = vadd.f32 %v620_v57, %v599_v18  ;;  %v2161_v4 = vadd.f32 %v1082_v19, %v1078_v0  ;;  %v2163_v2 = vadd.f32 %v1083_v15, %v1079_v26  ;;  %v1030_v50 = vmul.f32 %v672_v58, %v2037_v55 }
 0x193   : > { %v1031_v51 = vmul.f32 %v670_v28, %v2037_v55  ;;  %v639_v13 = vmul.f32 %v2052_v62, %v623_v14  ;;  %v671_v59 = vsel %vm669_vm6, %v2001_v35, %v668_v8  ;;  %v673_v20 = vsel %vm669_vm6, %v668_v8, %v2001_v35 }
 0x194   : > { %2461 = vst [vmem:[#allocation15_spill] sm:$0xff] %v2163_v2  ;;  %v640_v12 = vmul.f32 %v2055_v63, %v624_v45  ;;  %v676_v32 = vmul.f32 %v673_v20, %v2035_v54  ;;  %v677_v18 = vmul.f32 %v671_v59, %v2035_v54  ;;  %v1032_v19 = vmul.f32 %v673_v20, %v2037_v55 }
 0x195   : > { %v1033_v15 = vmul.f32 %v671_v59, %v2037_v55  ;;  %v685_v28 = vpop.permute.xlu1 %684  ;;  %v742_v62 = vpop.permute.xlu0 %741  ;;  %v655_v63 = vmul.f32 %v1908_v29, %v639_v13  ;;  %v687_v53 = vsel %vm686_vm7, %v2003_v36, %v683_v9  ;;  %v689_v35 = vsel %vm686_vm7, %v683_v9, %v2003_v36 }
 0x196   : > { %v656_v58 = vmul.f32 %v1908_v29, %v640_v12  ;;  %v691_v61 = vmul.f32 %v687_v53, %v2037_v55  ;;  %v692_v57 = vmul.f32 %v689_v35, %v2037_v55  ;;  %v1026_v0 = vmul.f32 %v687_v53, %v2035_v54 }
 0x197   : > { %v1027_v13 = vmul.f32 %v689_v35, %v2035_v54  ;;  %v688_v29 = vsel %vm686_vm7, %v2005_v37, %v685_v28  ;;  %v690_v12 = vsel %vm686_vm7, %v685_v28, %v2005_v37  ;;  %v746_v36 = vsel %vm745_vm8, %v2007_v39, %v742_v62 }
 0x198   : > { %v748_v26 = vsel %vm745_vm8, %v742_v62, %v2007_v39  ;;  %v695_v8 = vadd.f32 %v691_v61, %v674_v33  ;;  %v696_v9 = vadd.f32 %v692_v57, %v675_v30  ;;  %v2204_v14 = vadd.f32 %v1030_v50, %v1026_v0 }
 0x199   : > { %v2206_v45 = vadd.f32 %v1031_v51, %v1027_v13  ;;  %v744_v59 = vpop.permute.xlu1 %743  ;;  %v693_v20 = vmul.f32 %v688_v29, %v2037_v55  ;;  %v694_v53 = vmul.f32 %v690_v12, %v2037_v55  ;;  %v1028_v37 = vmul.f32 %v688_v29, %v2035_v54  ;;  %v759_v29 = vpop.permute.xlu0 %758 }
 0x19a   : > { %v1029_v28 = vmul.f32 %v690_v12, %v2035_v54  ;;  %v712_v35 = vmul.f32 %v2062_v1, %v695_v8  ;;  %v713_v2 = vmul.f32 %v2065_v5, %v696_v9  ;;  %v750_v39 = vmul.f32 %v748_v26, %v2035_v54 }
 0x19b   : > { %v751_v33 = vmul.f32 %v746_v36, %v2035_v54  ;;  %v697_v30 = vadd.f32 %v693_v20, %v676_v32  ;;  %v698_v50 = vadd.f32 %v694_v53, %v677_v18  ;;  %v2216_v51 = vadd.f32 %v1032_v19, %v1028_v37 }
 0x19c   : > { %v2218_v62 = vadd.f32 %v1033_v15, %v1029_v28  ;;  %v729_v61 = vmul.f32 %v1987_v21, %v712_v35  ;;  %v730_v57 = vmul.f32 %v1987_v21, %v713_v2  ;;  %v980_v0 = vmul.f32 %v748_v26, %v2037_v55 }
 0x19d   : > { %v981_v13 = vmul.f32 %v746_v36, %v2037_v55  ;;  %v714_v12 = vmul.f32 %v2062_v1, %v697_v30  ;;  %v715_v8 = vmul.f32 %v2065_v5, %v698_v50  ;;  %v747_v32 = vsel %vm745_vm8, %v2009_v40, %v744_v59  ;;  %v761_v19 = vpop.permute.xlu1 %760  ;;  %v818_v50 = vpop.permute.xlu0 %817 }
 0x19e   : > { %v749_v18 = vsel %vm745_vm8, %v744_v59, %v2009_v40  ;;  %v733_v15 = vadd.f32 %v729_v61, %v653_v34  ;;  %v734_v2 = vadd.f32 %v730_v57, %v654_v48  ;;  %v753_v36 = vmul.f32 %v747_v32, %v2035_v54 }
 0x19f   : > { %v752_v21 = vmul.f32 %v749_v18, %v2035_v54  ;;  %v731_v26 = vmul.f32 %v1910_v31, %v714_v12  ;;  %v732_v1 = vmul.f32 %v1910_v31, %v715_v8  ;;  %v982_v5 = vmul.f32 %v749_v18, %v2037_v55 }
 0x1a0   : > { %v983_v9 = vmul.f32 %v747_v32, %v2037_v55  ;;  %v763_v20 = vsel %vm762_vm9, %v2011_v41, %v759_v29  ;;  %v765_v40 = vsel %vm762_vm9, %v759_v29, %v2011_v41  ;;  %v764_v34 = vsel %vm762_vm9, %v2013_v42, %v761_v19 }
 0x1a1   : > { %v766_v31 = vsel %vm762_vm9, %v761_v19, %v2013_v42  ;;  %v735_v48 = vadd.f32 %v731_v26, %v655_v63  ;;  %v736_v59 = vadd.f32 %v732_v1, %v656_v58  ;;  %v767_v53 = vmul.f32 %v763_v20, %v2037_v55  ;;  %v820_v32 = vpop.permute.xlu1 %819 }
 0x1a2   : > { %v768_v37 = vmul.f32 %v765_v40, %v2037_v55  ;;  %v976_v28 = vmul.f32 %v763_v20, %v2035_v54  ;;  %v977_v41 = vmul.f32 %v765_v40, %v2035_v54  ;;  %v769_v35 = vmul.f32 %v764_v34, %v2037_v55 }
 0x1a3   : > { %v770_v30 = vmul.f32 %v766_v31, %v2037_v55  ;;  %v771_v61 = vadd.f32 %v767_v53, %v750_v39  ;;  %v978_v42 = vmul.f32 %v764_v34, %v2035_v54  ;;  %v979_v63 = vmul.f32 %v766_v31, %v2035_v54  ;;  %v834_v34 = vpop.permute.xlu0 %833 }
 0x1a4   : > { %v772_v57 = vadd.f32 %v768_v37, %v751_v33  ;;  %v984_v58 = vadd.f32 %v980_v0, %v976_v28  ;;  %v985_v29 = vadd.f32 %v981_v13, %v977_v41  ;;  %v773_v12 = vadd.f32 %v769_v35, %v752_v21 }
 0x1a5   : > { %v774_v8 = vadd.f32 %v770_v30, %v753_v36  ;;  %v788_v18 = vmul.f32 %v2068_v6, %v771_v61  ;;  %v2261_v26 = vadd.f32 %v982_v5, %v978_v42  ;;  %v2263_v1 = vadd.f32 %v983_v9, %v979_v63  ;;  %v836_v35 = vpop.permute.xlu1 %835 }
 0x1a6   : > { %v789_v19 = vmul.f32 %v2071_v7, %v772_v57  ;;  %v790_v39 = vmul.f32 %v2068_v6, %v773_v12  ;;  %v821_v0 = vsel %vm573_vm2, %v2015_v43, %v818_v50  ;;  %v823_v13 = vsel %vm573_vm2, %v818_v50, %v2015_v43 }
 0x1a7   : > { %v791_v33 = vmul.f32 %v2071_v7, %v774_v8  ;;  %v805_v21 = vmul.f32 %v1989_v22, %v788_v18  ;;  %v825_v5 = vmul.f32 %v823_v13, %v2035_v54  ;;  %v826_v9 = vmul.f32 %v821_v0, %v2035_v54 }
 0x1a8   : > { %v806_v36 = vmul.f32 %v1989_v22, %v789_v19  ;;  %v807_v6 = vmul.f32 %v1912_v38, %v790_v39  ;;  %v930_v20 = vmul.f32 %v823_v13, %v2037_v55  ;;  %v931_v40 = vmul.f32 %v821_v0, %v2037_v55 }
 0x1a9   : > { %v808_v7 = vmul.f32 %v1912_v38, %v791_v33  ;;  %v809_v31 = vadd.f32 %v805_v21, %v733_v15  ;;  %v822_v43 = vsel %vm573_vm2, %v2020_v46, %v820_v32  ;;  %v824_v22 = vsel %vm573_vm2, %v820_v32, %v2020_v46 }
 0x1aa   : > { %v810_v53 = vadd.f32 %v806_v36, %v734_v2  ;;  %v811_v37 = vadd.f32 %v807_v6, %v735_v48  ;;  %v827_v41 = vmul.f32 %v824_v22, %v2035_v54  ;;  %v828_v38 = vmul.f32 %v822_v43, %v2035_v54 }
 0x1ab   : > { %v812_v28 = vadd.f32 %v808_v7, %v736_v59  ;;  %v932_v30 = vmul.f32 %v824_v22, %v2037_v55  ;;  %v933_v15 = vmul.f32 %v822_v43, %v2037_v55  ;;  %v838_v2 = vsel %vm837_vm10, %v2022_v47, %v834_v34 }
 0x1ac   : > { %v840_v50 = vsel %vm837_vm10, %v834_v34, %v2022_v47  ;;  %v842_v46 = vmul.f32 %v838_v2, %v2037_v55  ;;  %v926_v59 = vmul.f32 %v838_v2, %v2035_v54  ;;  %v839_v57 = vsel %vm837_vm10, %v2048_v60, %v836_v35 }
 0x1ad   : > { %v843_v48 = vmul.f32 %v840_v50, %v2037_v55  ;;  %v927_v61 = vmul.f32 %v840_v50, %v2035_v54  ;;  %v841_v42 = vsel %vm837_vm10, %v836_v35, %v2048_v60  ;;  %v1001_v63 = vmul.f32 %v2080_v10, %v984_v58 }
 0x1ae   : > { %v1002_v47 = vmul.f32 %v2083_v11, %v985_v29  ;;  %v1011_v12 = vpop.permute.xlu0 %1010  ;;  %v846_v8 = vadd.f32 %v842_v46, %v825_v5  ;;  %v934_v18 = vadd.f32 %v930_v20, %v926_v59  ;;  %v844_v39 = vmul.f32 %v839_v57, %v2037_v55  ;;  %v2463_v59 = vld [vmem:[#allocation10_spill] sm:$0xff] }
 0x1af   : > { %v847_v32 = vadd.f32 %v843_v48, %v826_v9  ;;  %v935_v19 = vadd.f32 %v931_v40, %v927_v61  ;;  %v845_v33 = vmul.f32 %v841_v42, %v2037_v55  ;;  %v928_v0 = vmul.f32 %v839_v57, %v2035_v54  ;;  %v2462_v48 = vld [vmem:[#allocation9_spill] sm:$0xff] }
 0x1b0   : > { %v929_v13 = vmul.f32 %v841_v42, %v2035_v54  ;;  %v863_v3 = vmul.f32 %v2096_v16, %v846_v8  ;;  %v951_v58 = vmul.f32 %v2102_v24, %v934_v18  ;;  %v848_v21 = vadd.f32 %v844_v39, %v827_v41  ;;  %v2467_v18 = vld [vmem:[#allocation11_spill] sm:$0xff]  ;;  %v2468_v39 = vld [vmem:[#allocation14_spill] sm:$0xff] }
 0x1b1   : > { %v864_v60 = vmul.f32 %v2099_v17, %v847_v32  ;;  %v952_v29 = vmul.f32 %v2105_v44, %v935_v19  ;;  %v849_v36 = vadd.f32 %v845_v33, %v828_v38  ;;  %v936_v5 = vadd.f32 %v932_v30, %v928_v0  ;;  %v2466_v32 = vld [vmem:[#allocation13_spill] sm:$0xff]  ;;  %v2469_v33 = vld [vmem:[#allocation12_spill] sm:$0xff] }
 0x1b2   : > { %v937_v9 = vadd.f32 %v933_v15, %v929_v13  ;;  %v1016_v6 = vpop.permute.xlu1 %1015  ;;  %v880_v7 = vmul.f32 %v1991_v23, %v863_v3  ;;  %v968_v20 = vmul.f32 %v1993_v25, %v951_v58  ;;  %v1061_v40 = vpop.permute.xlu0 %1060  ;;  %v865_v34 = vmul.f32 %v2096_v16, %v848_v21 }
 0x1b3   : > { %v881_v55 = vmul.f32 %v1991_v23, %v864_v60  ;;  %v969_v54 = vmul.f32 %v1993_v25, %v952_v29  ;;  %v866_v43 = vmul.f32 %v2099_v17, %v849_v36  ;;  %v953_v22 = vmul.f32 %v2102_v24, %v936_v5 }
 0x1b4   : > { %v954_v41 = vmul.f32 %v2105_v44, %v937_v9  ;;  %v884_v38 = vadd.f32 %v880_v7, %v809_v31  ;;  %v1018_v30 = vmul.f32 %v1011_v12, %v1001_v63  ;;  %v1019_v15 = vmul.f32 %v1011_v12, %v1002_v47  ;;  %v2465_v12 = vld [vmem:[#allocation7_spill] sm:$0xff] }
 0x1b5   : > { %v885_v35 = vadd.f32 %v881_v55, %v810_v53  ;;  %v882_v2 = vmul.f32 %v1915_v49, %v865_v34  ;;  %v883_v23 = vmul.f32 %v1915_v49, %v866_v43  ;;  %v970_v50 = vmul.f32 %v1995_v27, %v953_v22  ;;  %v2470_v9 = vld [vmem:[#allocation15_spill] sm:$0xff] }
 0x1b6   : > { %v971_v25 = vmul.f32 %v1995_v27, %v954_v41  ;;  %v1066_v46 = vpop.permute.xlu1 %1065  ;;  %v922_v17 = vadd.f32 %v2033_v52, %v884_v38  ;;  %v1003_v24 = vmul.f32 %v2080_v10, %v2261_v26  ;;  %v1004_v44 = vmul.f32 %v2083_v11, %v2263_v1  ;;  %v1111_v63 = vpop.permute.xlu0 %1110  ;;  %v2464_v52 = vld [vmem:[#allocation8_spill] sm:$0xff] }
 0x1b7   : > { %v923_v16 = vadd.f32 %v2040_v56, %v885_v35  ;;  %v886_v31 = vadd.f32 %v882_v2, %v811_v37  ;;  %v887_v53 = vadd.f32 %v883_v23, %v812_v28  ;;  %v1051_v49 = vmul.f32 %v2462_v48, %v2204_v14 }
 0x1b8   : > { %v1052_v61 = vmul.f32 %v2463_v59, %v2206_v45  ;;  %v972_v57 = vadd.f32 %v968_v20, %v922_v17  ;;  %v1020_v42 = vmul.f32 %v1016_v6, %v1003_v24  ;;  %v1021_v56 = vmul.f32 %v1016_v6, %v1004_v44 }
 0x1b9   : > { %v973_v27 = vadd.f32 %v969_v54, %v923_v16  ;;  %v925_v47 = vadd.f32 %v2464_v52, %v887_v53  ;;  %v924_v10 = vadd.f32 %v2465_v12, %v886_v31  ;;  %v1068_v26 = vmul.f32 %v1061_v40, %v1051_v49  ;;  %v1162_v12 = vld [vmem:[%s2426_s6] sm:$0xf] }
 0x1ba   : > { %v1069_v8 = vmul.f32 %v1061_v40, %v1052_v61  ;;  %v1022_v11 = vadd.f32 %v1018_v30, %v972_v57  ;;  %v1053_v37 = vmul.f32 %v2462_v48, %v2216_v51  ;;  %v1054_v14 = vmul.f32 %v2463_v59, %v2218_v62  ;;  %v1116_v13 = vpop.permute.xlu1 %1115  ;;  %v1131_v7 = vpop.permute.xlu0 %1130 }
 0x1bb   : > { %v1023_v1 = vadd.f32 %v1019_v15, %v973_v27  ;;  %v975_v45 = vadd.f32 %v971_v25, %v925_v47  ;;  %v974_v28 = vadd.f32 %v970_v50, %v924_v10  ;;  %v1101_v19 = vmul.f32 %v2467_v18, %v2466_v32 }
 0x1bc   : > { %v1102_v0 = vmul.f32 %v2469_v33, %v2468_v39  ;;  %v1070_v3 = vmul.f32 %v1066_v46, %v1053_v37  ;;  %v1071_v60 = vmul.f32 %v1066_v46, %v1054_v14  ;;  %v1072_v58 = vadd.f32 %v1068_v26, %v1022_v11  ;;  %v1390_v39 = vld [vmem:[%s2432_s12] sm:$0xf] }
 0x1bd   : > { %v1073_v29 = vadd.f32 %v1069_v8, %v1023_v1  ;;  %v1118_v21 = vmul.f32 %v1111_v63, %v1101_v19  ;;  %v1024_v5 = vadd.f32 %v1020_v42, %v974_v28  ;;  %v1025_v51 = vadd.f32 %v1021_v56, %v975_v45  ;;  %v1221_v19 = vld [vmem:[%s2428_s8] sm:$0x3]  ;;  %1564 = vmatmul.mubr.msk.bf16.vlgmr.msra.gmra.mxu0 %vm492_vm1, %v1390_v39 }
 0x1be   : > { %v1119_v36 = vmul.f32 %v1111_v63, %v1102_v0  ;;  %v1103_v62 = vmul.f32 %v2467_v18, %v2161_v4  ;;  %v1104_v6 = vmul.f32 %v2469_v33, %v2470_v9  ;;  %v1136_v38 = vpop.permute.xlu1 %1135  ;;  %v2471_v10 = vmov 0.0   ;;  %v1169_v8 = vpop.permute.xlu0 %1168  ;;  %v1222_v33 = vld [vmem:[%s2429_s9] sm:$0x3] }
 0x1bf   : > { %v1122_v20 = vadd.f32 %v1118_v21, %v1072_v58  ;;  %v1074_v54 = vadd.f32 %v1070_v3, %v1024_v5  ;;  %v1075_v40 = vadd.f32 %v1071_v60, %v1025_v51  ;;  %v1297_v58 = vld [vmem:[%s2430_s10] sm:$0xff] }
 0x1c0   : > { %v1123_v55 = vadd.f32 %v1119_v36, %v1073_v29  ;;  %v1120_v34 = vmul.f32 %v1116_v13, %v1103_v62  ;;  %v1121_v43 = vmul.f32 %v1116_v13, %v1104_v6  ;;  %v1298_v29 = vld [vmem:[%s2431_s11] sm:$0xff] }
 0x1c1   : > { %v1138_v22 = vadd.f32 %v1131_v7, %v1122_v20 }
 0x1c2   : > { %v1139_v41 = vadd.f32 %v1131_v7, %v1123_v55  ;;  %v1125_v35 = vadd.f32 %v1121_v43, %v1075_v40  ;;  %v1124_v30 = vadd.f32 %v1120_v34, %v1074_v54  ;;  %v1437_v40 = vld [vmem:[%s2433_s13] sm:$0xff] }
 0x1c3   : > { %v1142_v15 = vadd.f32 3.0, %v1138_v22 }
 0x1c4   : > { %v1143_v2 = vadd.f32 3.0, %v1139_v41  ;;  %v1140_v23 = vadd.f32 %v1136_v38, %v1124_v30  ;;  %v1141_v50 = vadd.f32 %v1136_v38, %v1125_v35 }
 0x1c5   : > { %v1146_v4 = vmax.f32 %v1142_v15, 0.0 }
 0x1c6   : > { %v1147_v25 = vmax.f32 %v1143_v2, 0.0  ;;  %v1144_v46 = vadd.f32 3.0, %v1140_v23  ;;  %v1145_v16 = vadd.f32 3.0, %v1141_v50 }
 0x1c7   : > { %v1150_v17 = vmin.f32 %v1146_v4, 6.0 }
 0x1c8   : > { %v1151_v24 = vmin.f32 %v1147_v25, 6.0  ;;  %v1148_v44 = vmax.f32 %v1144_v46, 0.0  ;;  %v1149_v31 = vmax.f32 %v1145_v16, 0.0 }
 0x1c9   : > { %v1154_v48 = vmul.f32 %v1150_v17, %v1138_v22 }
 0x1ca   : > { %v1155_v53 = vmul.f32 %v1151_v24, %v1139_v41  ;;  %v1152_v49 = vmin.f32 %v1148_v44, 6.0  ;;  %v1153_v59 = vmin.f32 %v1149_v31, 6.0 }
 0x1cb   : > { %v1158_v56 = vmul.f32 0.16666667, %v1154_v48 }
 0x1cc   : > { %v1156_v61 = vmul.f32 %v1152_v49, %v1140_v23  ;;  %v1157_v27 = vmul.f32 %v1153_v59, %v1141_v50  ;;  %v1159_v57 = vmul.f32 0.16666667, %v1155_v53 }
 0x1ce   : > { %v1161_v42 = vmul.f32 0.16666667, %v1157_v27  ;;  %v1160_v63 = vmul.f32 0.16666667, %v1156_v61 }
 0x1d0   : > { %v1164_v52 = vpack.c.bf16 %v1161_v42, %v1159_v57  ;;  %v1163_v47 = vpack.c.bf16 %v1160_v63, %v1158_v56 }
 0x1d2   : > { %1189 = vmatprep.subr.bf16.mxu1 %v1164_v52 }
 0x1d3   : > { %1190 = vmatpush1.bf16.msra.mxu1 %v1163_v47 }
 0x1d4   : > { %1576 = vmatprep.subr.mxu1 %v2471_v10 }
 0x1d6   : > { %1558 = vmatmul.mubr.msk.bf16.vlgmr.msra.gmra.mxu1 %vm1171_vm11, %v1162_v12 }
 0x1d7   : > { %1578 = vmatprep.mubr.msk.f32.mxu1 %vm1721_vm12, %v2471_v10 }
 0x27d   : > { %v1428_v6 = vpop.f32.mrf.mxu0 }
 0x27f   : > { %v1430_v7 = vpop.f32.mrf.mxu0 }
 0x281   : > { %v1432_v55 = vpop.f32.mrf.mxu0 }
 0x283   : > { %v1433_v54 = vpop.f32.mrf.mxu0 }
 0x296   : > { %v1209_v26 = vpop.f32.mrf.mxu1 }
 0x297   : > { %v1210_v1 = vadd.f32 %v1209_v26, %v1169_v8 }
 0x298   : > { %v1211_v11 = vpop.f32.mrf.mxu1 }
 0x299   : > { %v1212_v37 = vadd.f32 %v1211_v11, %v1169_v8 }
 0x29a   : > { %v1213_v14 = vpop.f32.mrf.mxu1 }
 0x29b   : > { %v1216_v45 = vadd.f32 %v1212_v37, %v1210_v1 }
 0x29c   : > { %v1214_v28 = vpop.f32.mrf.mxu1 }
 0x29d   : > { %1217 = vadd.xlane.f32.xlu1 %v1216_v45 }
 0x326   : > { %v1218_v32 = vpop.xlane.xlu1 %1217 }
 0x327   : > { %v1220_v18 = vmul.f32 0.00390625, %v1218_v32 }
 0x329   : > { %1577 = vmatpush3.msra.mxu1 %v1220_v18 }
 0x32a   : > { %1579 = vmatmul.mubr.msk.f32.vlgmr.msra.gmra.mxu1 %vm492_vm1, %v1221_v19  ;;  %1581 = vmatprep.subr.mxu1 %v2471_v10 }
 0x32b   : > { %1583 = vmatprep.mubr.msk.f32.mxu1 %vm1721_vm12, %v2471_v10 }
 0x3ea   : > { %v1292_v0 = vpop.f32.mrf.mxu1 }
 0x3eb   : > { %v1293_v13 = vadd.f32 %v1292_v0, %v1222_v33 }
 0x3ec   : > { %v1580_v3 = vpop.f32.mrf.mxu1 }
 0x3ed   : > { %v1296_v60 = vmax.f32 %v1293_v13, 0.0 }
 0x3ef   : > { %1582 = vmatpush3.msk.msra.mxu1 %vm1303_vm13, %v1296_v60 }
 0x3f0   : > { %1584 = vmatmul.mubr.msk.f32.vlgmr.msra.gmra.mxu1 %vm1299_vm14, %v1297_v58 }
 0x4b0   : > { %v1373_v21 = vpop.f32.mrf.mxu1 }
 0x4b1   : > { %v1374_v36 = vadd.f32 %v1373_v21, %v1298_v29 }
 0x4b2   : > { %v1585_v5 = vpop.f32.mrf.mxu1 }
 0x4b3   : > { %v1562_v51 = vmul.f32 -1.442695, %v1374_v36 }
 0x4b5   : > { %1645 = vpow2.f32 %v1562_v51 }
 0x4c2   : > { %v1646_v62 = vpop.eup %1645 }
 0x4c3   : > { %v1380_v9 = vadd.f32 1.0, %v1646_v62 }
 0x4c5   : > { %1647 = vrcp.f32 %v1380_v9 }
 0x4d2   : > { %v1648_v20 = vpop.eup %1647 }
 0x4d3   : > { %1385 = vperm.xlu0 %1640, %v1648_v20  }
 0x4d7   : > { %1440 = vperm.xlu0 %1640, %v1437_v40  }
 0x54e   : > { %v1386_v34 = vpop.permute.xlu0 %1385 }
 0x54f   : > { %v1388_v43 = vmul.f32 %v1386_v34, %v1210_v1  ;;  %v1389_v22 = vmul.f32 %v1386_v34, %v1212_v37 }
 0x551   : > { %v1436_v41 = vadd.f32 %v1430_v7, %v1389_v22  ;;  %v1435_v38 = vadd.f32 %v1428_v6, %v1388_v43 }
 0x552   : > { %v1441_v35 = vpop.permute.xlu0 %1440 }
 0x553   : > { %v1443_v30 = vadd.f32 %v1441_v35, %v1435_v38  ;;  %v1444_v15 = vadd.f32 %v1441_v35, %v1436_v41 }
 0x555   : > { %1445 = vst [vmem:[%s460_s18] sm:$0xff] %v1443_v30  ;;  %1446 = vst [vmem:[%s460_s18 + $0x8] sm:$0xff] %v1444_v15 }
 0x556   : > { %1662 = shalt.err (!%p1659_p3)
}
 0x557   : > { %s1663_s0 = scalar_lea.hbm %s2385_s15, 256  ;;  %s1667_s21 = scalar_lea.hbm %s2434_s14, 512 }
 0x558   : > { %p1664_p4 = scmp.ne.s32.totalorder %s2385_s15, %s1663_s0  ;;  %p1668_p9 = scmp.lt.s32.totalorder %s2385_s15, %s2434_s14 }
 0x559   : > { %p1669_p10 = scmp.lt.s32.totalorder %s1667_s21, %s1663_s0 }
 0x55a   : > { %p1665_p7 = pnand %p1664_p4, %p1836_p5 }
 0x55b   : > { %p1670_p11 = por %p1669_p10, %p1668_p9 }
 0x55c   : > { %p1666_p8 = pneg %p1665_p7 }
 0x55e   : > { %p1671_p12 = pnand %p1670_p11, %p1666_p8 }
 0x560   : > { %1674 = shalt.err (!%p1671_p12)
}
 0x561   : > { %1590 = dma.vmem_to_hbm [thread:$0]  (%p1836_p5), %s1463_s22, 256, %s2385_s15, %s1448_s26  }
 0x562 PF: > { %p1596_p13 = scmp.ge.s32.totalorder %s1709_s16, 2  ;;  %s1474_s28 = sand.u32 1, %s1697_s29  }
 0x563   : > { %s1475_s2 = scalar_lea.sflag [#allocation3], %s1474_s28 }
 0x564   : > { %p1593_p0 = pnand %p1596_p13, %p1840_p6 }
 0x566   : > { %p1594_p1 = pneg %p1593_p0 }
 0x568   : > { %1692 = dma.done.wait (%p1594_p1), %s1475_s2, 256  }
 0x569   : > { %1694 = vsyncadd (%p1594_p1), %s1475_s2, 4294967040  ;;  %s2472_s25 = sld [smem:[#allocation5_spill]]  ;;  %p24_p2 = scmp.ge.s32.totalorder %s1823_s19, 4  }
 0x56a   : > { %s2473_s15 = sld [smem:[#allocation6_spill]]  ;;  %s2474_s29 = smov %s1701_s30 }
 0x56b   : > { %s2476_s16 = smov %s1823_s19  ;;  %26 = sbr.rel (!%p24_p2) target bundleno = 6 (0x6), region = 127 }
 0x56f   : > { %s2475_s30 = smov %s2472_s25 }
 0x570   :  { %1480 = vsyncpa [#allocation3], 1 }
 0x571   :  { %1482 = vsyncpa [#allocation3 + $0x1], 1 }

</bundles_post_ra>
